<compile_context>
chip_gen: v7x
topology: tpu7x:2x2x1
jax: 0.10.0
libtpu: 0.0.40
codegen_flags: <defaults>
</compile_context>

<pallas_src>
import functools

import jax
import jax.numpy as jnp
from jax.experimental import pallas as pl
from jax.experimental.pallas import tpu as pltpu


MXU_INPUT_DTYPE = jnp.bfloat16   # set to jnp.float32 for exact f32 numerics
KSIZE = 5
STRIDE = 2
CONV_CHANNELS = (16, 32, 32)
TM_CAP = 2048                    # multiple of 16; resident tile set stays << VMEM
VMEM_LIMIT_BYTES = 32 * 1024 * 1024


def _round_up(x, m):
    return ((x + m - 1) // m) * m


def _pick_tm(M):
    """Row-tile size: multiple of 16, <= TM_CAP, >= 2 grid steps when M is
    large enough (v7x megacore), preferring a tm that divides M evenly so the
    last block is not ragged/masked."""
    if M <= 64:
        return M                                   # tiny: single full block
    target = min(TM_CAP, _round_up((M + 1) // 2, 16))
    # Search a small window below the target for an even divisor of M.
    for tm in range(target, max(target - 256, 16) - 1, -16):
        if M % tm == 0:
            return tm
    return target                                  # ragged tail handled by masked stores


# ---------------------------------------------------------------------------
# Pallas kernel: fused (X @ W) + bias (+ ReLU), stored at native output width
# ---------------------------------------------------------------------------
def _fused_matmul_bias_kernel(x_ref, w_ref, b_ref, o_ref, *, apply_relu):
    acc = jnp.dot(x_ref[...], w_ref[...], preferred_element_type=jnp.float32)
    y = acc + b_ref[...]
    if apply_relu:
        y = jnp.maximum(y, 0.0)
    o_ref[...] = y.astype(o_ref.dtype)


def fused_matmul_bias(x, w, bias, *, apply_relu, out_dtype):
    """relu?((x @ w) + bias) on the MXU.

    x:    (M, K)  activations / im2col patches, already MXU_INPUT_DTYPE
    w:    (K, N)  weight with BN scale folded in (N = true cout, no lane pad)
    bias: (1, N)  f32 bias row (BN shift + conv bias folded)
    Returns (M, N) in `out_dtype`.
    """
    M, K = x.shape
    Kw, N = w.shape
    assert K == Kw
    assert x.dtype == MXU_INPUT_DTYPE and w.dtype == MXU_INPUT_DTYPE

    tm = _pick_tm(M)
    grid = (pl.cdiv(M, tm),)

    # Narrow (N=16/32/2) output blocks are legal because N equals the full
    # last dim; the masked vst cost is hidden under DMA for this mem-bound
    # kernel and is far cheaper than the 8x/4x padded f32 writeback it
    # replaces (per review: option (b)+(c)).
    # TODO(synk): optional pipeline_mode=pl.Buffered(3) on the x spec if
    # profiling on v7x shows exposed DMA at large tm.
    return pl.pallas_call(
        functools.partial(_fused_matmul_bias_kernel, apply_relu=apply_relu),
        out_shape=jax.ShapeDtypeStruct((M, N), out_dtype),
        grid=grid,
        in_specs=[
            pl.BlockSpec((tm, K), lambda i: (i, 0)),   # row tile of activations
            pl.BlockSpec((K, N), lambda i: (0, 0)),    # full weight (VMEM-resident)
            pl.BlockSpec((1, N), lambda i: (0, 0)),    # per-channel bias row
        ],
        out_specs=pl.BlockSpec((tm, N), lambda i: (i, 0)),
        compiler_params=pltpu.CompilerParams(
            dimension_semantics=("parallel",),          # shards rows across v7x's 2 TCs
            vmem_limit_bytes=VMEM_LIMIT_BYTES),
    )(x, w, bias)


# ---------------------------------------------------------------------------
# Glue: NHWC im2col (feature order (kh, kw, ci) to match the prepped weights)
# ---------------------------------------------------------------------------
def im2col_nhwc(x, k, stride):
    N, H, W, C = x.shape
    Ho = (H - k) // stride + 1
    Wo = (W - k) // stride + 1
    cols = []
    for i in range(k):
        for j in range(k):
            cols.append(x[:, i:i + stride * Ho:stride, j:j + stride * Wo:stride, :])
    patches = jnp.stack(cols, axis=3)                  # (N, Ho, Wo, k*k, C)
    return patches.reshape(N * Ho * Wo, k * k * C), Ho, Wo


# ---------------------------------------------------------------------------
# One-time parameter preparation: fold conv-bias + BN into (weight, bias),
# reorder to (kh, kw, ci) x Cout, permute the head weight to NHWC flatten
# order, cast MXU operands to MXU_INPUT_DTYPE.  No K / lane padding needed
# (full-dim blocks are always legal).
# ---------------------------------------------------------------------------
def conv2d_size_out(size, kernel_size=5, stride=2):
    return (size - (kernel_size - 1) - 1) // stride + 1


def prepare_params(p, h, w, eps=1e-5):
    prepared = {}
    for li in (1, 2, 3):
        cw, cb = p[f"w{li}"], p[f"b{li}"]
        g, be, rm, rv = p[f"g{li}"], p[f"be{li}"], p[f"m{li}"], p[f"v{li}"]
        cout, cin, k, _ = cw.shape
        scale = g / jnp.sqrt(rv + eps)                               # (Cout,)
        w2d = cw.transpose(2, 3, 1, 0).reshape(k * k * cin, cout)    # (kh,kw,ci) x Cout
        w2d = w2d * scale[None, :]                                   # fold BN scale
        bias = (cb - rm) * scale + be                                # fold BN shift + conv bias
        prepared[f"conv{li}_w"] = w2d.astype(MXU_INPUT_DTYPE)
        prepared[f"conv{li}_b"] = bias.reshape(1, cout).astype(jnp.float32)

    # Head: PyTorch flattens NCHW (c, h, w); we flatten NHWC (h, w, c).
    # Permute the weight columns once so the result is identical in order.
    convw = conv2d_size_out(conv2d_size_out(conv2d_size_out(w)))
    convh = conv2d_size_out(conv2d_size_out(conv2d_size_out(h)))
    c3 = p["w3"].shape[0]
    hw = p["head_w"]                                                 # (outputs, c3*convh*convw)
    outputs = hw.shape[0]
    hw = hw.reshape(outputs, c3, convh, convw).transpose(0, 2, 3, 1)
    hw = hw.reshape(outputs, convh * convw * c3).T                   # (L, outputs), NHWC order
    prepared["head_w"] = hw.astype(MXU_INPUT_DTYPE)
    prepared["head_b"] = p["head_b"].reshape(1, outputs).astype(jnp.float32)
    return prepared


# ---------------------------------------------------------------------------
# Forward pass (NHWC + bf16 internally; accepts NCHW f32 like the PyTorch module)
# ---------------------------------------------------------------------------
def dqn_forward(prepared, x_nchw):
    # Single NCHW->NHWC transpose and a single cast on the (small) activation
    # tensor, before im2col duplicates it 25x.
    x = jnp.transpose(x_nchw, (0, 2, 3, 1)).astype(MXU_INPUT_DTYPE)
    n = x.shape[0]
    for li, cout in enumerate(CONV_CHANNELS, start=1):
        w = prepared[f"conv{li}_w"]
        b = prepared[f"conv{li}_b"]
        patches, ho, wo = im2col_nhwc(x, KSIZE, STRIDE)
        y = fused_matmul_bias(patches, w, b, apply_relu=True,
                              out_dtype=MXU_INPUT_DTYPE)             # bf16 conv output
        x = y.reshape(n, ho, wo, cout)
    flat = x.reshape(n, -1)                            # NHWC flatten (head_w pre-permuted)
    return fused_matmul_bias(flat, prepared["head_w"], prepared["head_b"],
                             apply_relu=False, out_dtype=jnp.float32)


# ---------------------------------------------------------------------------
# Deterministic raw parameter construction (PyTorch layouts, DQN.__init__ shapes)
# ---------------------------------------------------------------------------
def init_params(key, h, w, outputs):
    convw = conv2d_size_out(conv2d_size_out(conv2d_size_out(w)))
    convh = conv2d_size_out(conv2d_size_out(conv2d_size_out(h)))
    linear_input_size = convw * convh * 32

    ks = jax.random.split(key, 20)
    p = {}
    # conv1: 3 -> 16
    p["w1"] = 0.1 * jax.random.normal(ks[0], (16, 3, 5, 5), jnp.float32)
    p["b1"] = 0.1 * jax.random.normal(ks[1], (16,), jnp.float32)
    p["g1"] = 1.0 + 0.1 * jax.random.normal(ks[2], (16,), jnp.float32)
    p["be1"] = 0.1 * jax.random.normal(ks[3], (16,), jnp.float32)
    p["m1"] = 0.1 * jax.random.normal(ks[4], (16,), jnp.float32)
    p["v1"] = 1.0 + 0.1 * jax.random.uniform(ks[5], (16,), jnp.float32)
    # conv2: 16 -> 32
    p["w2"] = 0.1 * jax.random.normal(ks[6], (32, 16, 5, 5), jnp.float32)
    p["b2"] = 0.1 * jax.random.normal(ks[7], (32,), jnp.float32)
    p["g2"] = 1.0 + 0.1 * jax.random.normal(ks[8], (32,), jnp.float32)
    p["be2"] = 0.1 * jax.random.normal(ks[9], (32,), jnp.float32)
    p["m2"] = 0.1 * jax.random.normal(ks[10], (32,), jnp.float32)
    p["v2"] = 1.0 + 0.1 * jax.random.uniform(ks[11], (32,), jnp.float32)
    # conv3: 32 -> 32
    p["w3"] = 0.1 * jax.random.normal(ks[12], (32, 32, 5, 5), jnp.float32)
    p["b3"] = 0.1 * jax.random.normal(ks[13], (32,), jnp.float32)
    p["g3"] = 1.0 + 0.1 * jax.random.normal(ks[14], (32,), jnp.float32)
    p["be3"] = 0.1 * jax.random.normal(ks[15], (32,), jnp.float32)
    p["m3"] = 0.1 * jax.random.normal(ks[16], (32,), jnp.float32)
    p["v3"] = 1.0 + 0.1 * jax.random.uniform(ks[17], (32,), jnp.float32)
    # head: linear_input_size -> outputs  (PyTorch Linear weight layout: (out, in))
    p["head_w"] = 0.1 * jax.random.normal(ks[18], (outputs, linear_input_size), jnp.float32)
    p["head_b"] = 0.1 * jax.random.normal(ks[19], (outputs,), jnp.float32)
    return p


if __name__ == "__main__":
    # Three stride-2 k=5 convs need spatial >= 29.
    BATCH, H, W, OUTPUTS = 2, 40, 40, 2   # 40 -> 18 -> 7 -> 2 ; flat = 2*2*32 = 128
    key = jax.random.PRNGKey(0)
    kp, kx = jax.random.split(key)
    raw_params = init_params(kp, H, W, OUTPUTS)
    prepared = prepare_params(raw_params, H, W)          # one-time fold / permute / cast
    x = jax.random.normal(kx, (BATCH, 3, H, W), jnp.float32)   # NCHW like PyTorch

    fwd = jax.jit(dqn_forward)
    out = fwd(prepared, x)
    out = jax.block_until_ready(out)
    assert out.shape == (BATCH, OUTPUTS), out.shape
    assert out.dtype == jnp.float32
    print("KERNEL_OK")
</pallas_src>

<mosaic_0001>
module attributes {stable_mosaic.version = 11 : i64} {
  func.func @_fused_matmul_bias_kernel(%arg0: i32, %arg1: memref<336x75xbf16, #tpu.memory_space<vmem>>, %arg2: memref<75x16xbf16, #tpu.memory_space<vmem>>, %arg3: memref<1x16xf32, #tpu.memory_space<vmem>>, %arg4: memref<336x16xbf16, #tpu.memory_space<vmem>>) attributes {dimension_semantics = [#tpu.dimension_semantics<parallel>], iteration_bounds = array<i64: 2>, scalar_prefetch = 0 : i64, scratch_operands = 0 : i64, tpu.core_type = #tpu.core_type<tc>, window_params = [{transform_indices = @transform_0, window_bounds = array<i64: 336, 75>}, {pipeline_mode = #tpu.pipeline_mode<synchronous>, transform_indices = @transform_1, window_bounds = array<i64: 75, 16>}, {pipeline_mode = #tpu.pipeline_mode<synchronous>, transform_indices = @transform_2, window_bounds = array<i64: 1, 16>}, {transform_indices = @transform_3, window_bounds = array<i64: 336, 16>}]} {
    %c0 = arith.constant 0 : index
    %c0_0 = arith.constant 0 : index
    %0 = vector.load %arg1[%c0, %c0_0] : memref<336x75xbf16, #tpu.memory_space<vmem>>, vector<336x75xbf16>
    %c0_1 = arith.constant 0 : index
    %c0_2 = arith.constant 0 : index
    %1 = vector.load %arg2[%c0_1, %c0_2] : memref<75x16xbf16, #tpu.memory_space<vmem>>, vector<75x16xbf16>
    %cst = arith.constant dense<0.000000e+00> : vector<336x16xf32>
    %2 = tpu.matmul %0, %1, %cst {dimension_numbers = #tpu.dot_dimension_numbers<[1], [0], [0], [1], [0, 0, 1, 1], [], []>} : vector<336x75xbf16>, vector<75x16xbf16>, vector<336x16xf32> -> vector<336x16xf32>
    %c0_3 = arith.constant 0 : index
    %c0_4 = arith.constant 0 : index
    %3 = vector.load %arg3[%c0_3, %c0_4] : memref<1x16xf32, #tpu.memory_space<vmem>>, vector<1x16xf32>
    %4 = vector.broadcast %3 : vector<1x16xf32> to vector<336x16xf32>
    %5 = arith.addf %2, %4 : vector<336x16xf32>
    %cst_5 = arith.constant 0.000000e+00 : f32
    %6 = vector.broadcast %cst_5 : f32 to vector<336x16xf32>
    %7 = arith.maximumf %5, %6 : vector<336x16xf32>
    %8 = arith.truncf %7 : vector<336x16xf32> to vector<336x16xbf16>
    %c0_6 = arith.constant 0 : index
    %c0_7 = arith.constant 0 : index
    %9 = vector.load %arg4[%c0_6, %c0_7] : memref<336x16xbf16, #tpu.memory_space<vmem>>, vector<336x16xbf16>
    tpu.vector_store %arg4[%c0_6, %c0_7], %8 {strides = array<i32>} : memref<336x16xbf16, #tpu.memory_space<vmem>>, vector<336x16xbf16>,
    return
  }
  func.func @transform_0(%arg0: i32) -> (i32, i32) {
    %c0_i32 = arith.constant 0 : i32
    %c0_i32_0 = arith.constant 0 : i32
    return %arg0, %c0_i32 : i32, i32
  }
  func.func @transform_1(%arg0: i32) -> (i32, i32) {
    %c0_i32 = arith.constant 0 : i32
    %c0_i32_0 = arith.constant 0 : i32
    %c0_i32_1 = arith.constant 0 : i32
    return %c0_i32, %c0_i32_0 : i32, i32
  }
  func.func @transform_2(%arg0: i32) -> (i32, i32) {
    %c0_i32 = arith.constant 0 : i32
    %c0_i32_0 = arith.constant 0 : i32
    %c0_i32_1 = arith.constant 0 : i32
    return %c0_i32, %c0_i32_0 : i32, i32
  }
  func.func @transform_3(%arg0: i32) -> (i32, i32) {
    %c0_i32 = arith.constant 0 : i32
    %c0_i32_0 = arith.constant 0 : i32
    return %arg0, %c0_i32 : i32, i32
  }
}

module attributes {stable_mosaic.version = 11 : i64} {
  func.func @_fused_matmul_bias_kernel(%arg0: i32, %arg1: memref<64x400xbf16, #tpu.memory_space<vmem>>, %arg2: memref<400x32xbf16, #tpu.memory_space<vmem>>, %arg3: memref<1x32xf32, #tpu.memory_space<vmem>>, %arg4: memref<64x32xbf16, #tpu.memory_space<vmem>>) attributes {dimension_semantics = [#tpu.dimension_semantics<parallel>], iteration_bounds = array<i64: 2>, scalar_prefetch = 0 : i64, scratch_operands = 0 : i64, tpu.core_type = #tpu.core_type<tc>, window_params = [{transform_indices = @transform_0, window_bounds = array<i64: 64, 400>}, {pipeline_mode = #tpu.pipeline_mode<synchronous>, transform_indices = @transform_1, window_bounds = array<i64: 400, 32>}, {pipeline_mode = #tpu.pipeline_mode<synchronous>, transform_indices = @transform_2, window_bounds = array<i64: 1, 32>}, {transform_indices = @transform_3, window_bounds = array<i64: 64, 32>}]} {
    %c0 = arith.constant 0 : index
    %c0_0 = arith.constant 0 : index
    %0 = vector.load %arg1[%c0, %c0_0] : memref<64x400xbf16, #tpu.memory_space<vmem>>, vector<64x400xbf16>
    %c0_1 = arith.constant 0 : index
    %c0_2 = arith.constant 0 : index
    %1 = vector.load %arg2[%c0_1, %c0_2] : memref<400x32xbf16, #tpu.memory_space<vmem>>, vector<400x32xbf16>
    %cst = arith.constant dense<0.000000e+00> : vector<64x32xf32>
    %2 = tpu.matmul %0, %1, %cst {dimension_numbers = #tpu.dot_dimension_numbers<[1], [0], [0], [1], [0, 0, 1, 1], [], []>} : vector<64x400xbf16>, vector<400x32xbf16>, vector<64x32xf32> -> vector<64x32xf32>
    %c0_3 = arith.constant 0 : index
    %c0_4 = arith.constant 0 : index
    %3 = vector.load %arg3[%c0_3, %c0_4] : memref<1x32xf32, #tpu.memory_space<vmem>>, vector<1x32xf32>
    %4 = vector.broadcast %3 : vector<1x32xf32> to vector<64x32xf32>
    %5 = arith.addf %2, %4 : vector<64x32xf32>
    %cst_5 = arith.constant 0.000000e+00 : f32
    %6 = vector.broadcast %cst_5 : f32 to vector<64x32xf32>
    %7 = arith.maximumf %5, %6 : vector<64x32xf32>
    %8 = arith.truncf %7 : vector<64x32xf32> to vector<64x32xbf16>
    %c0_6 = arith.constant 0 : index
    %c0_7 = arith.constant 0 : index
    %9 = vector.load %arg4[%c0_6, %c0_7] : memref<64x32xbf16, #tpu.memory_space<vmem>>, vector<64x32xbf16>
    tpu.vector_store %arg4[%c0_6, %c0_7], %8 {strides = array<i32>} : memref<64x32xbf16, #tpu.memory_space<vmem>>, vector<64x32xbf16>,
    return
  }
  func.func @transform_0(%arg0: i32) -> (i32, i32) {
    %c0_i32 = arith.constant 0 : i32
    %c0_i32_0 = arith.constant 0 : i32
    return %arg0, %c0_i32 : i32, i32
  }
  func.func @transform_1(%arg0: i32) -> (i32, i32) {
    %c0_i32 = arith.constant 0 : i32
    %c0_i32_0 = arith.constant 0 : i32
    %c0_i32_1 = arith.constant 0 : i32
    return %c0_i32, %c0_i32_0 : i32, i32
  }
  func.func @transform_2(%arg0: i32) -> (i32, i32) {
    %c0_i32 = arith.constant 0 : i32
    %c0_i32_0 = arith.constant 0 : i32
    %c0_i32_1 = arith.constant 0 : i32
    return %c0_i32, %c0_i32_0 : i32, i32
  }
  func.func @transform_3(%arg0: i32) -> (i32, i32) {
    %c0_i32 = arith.constant 0 : i32
    %c0_i32_0 = arith.constant 0 : i32
    return %arg0, %c0_i32 : i32, i32
  }
}

module attributes {stable_mosaic.version = 11 : i64} {
  func.func @_fused_matmul_bias_kernel(%arg0: i32, %arg1: memref<8x800xbf16, #tpu.memory_space<vmem>>, %arg2: memref<800x32xbf16, #tpu.memory_space<vmem>>, %arg3: memref<1x32xf32, #tpu.memory_space<vmem>>, %arg4: memref<8x32xbf16, #tpu.memory_space<vmem>>) attributes {dimension_semantics = [#tpu.dimension_semantics<parallel>], iteration_bounds = array<i64: 1>, scalar_prefetch = 0 : i64, scratch_operands = 0 : i64, tpu.core_type = #tpu.core_type<tc>, window_params = [{transform_indices = @transform_0, window_bounds = array<i64: 8, 800>}, {pipeline_mode = #tpu.pipeline_mode<synchronous>, transform_indices = @transform_1, window_bounds = array<i64: 800, 32>}, {pipeline_mode = #tpu.pipeline_mode<synchronous>, transform_indices = @transform_2, window_bounds = array<i64: 1, 32>}, {transform_indices = @transform_3, window_bounds = array<i64: 8, 32>}]} {
    %c0 = arith.constant 0 : index
    %c0_0 = arith.constant 0 : index
    %0 = vector.load %arg1[%c0, %c0_0] : memref<8x800xbf16, #tpu.memory_space<vmem>>, vector<8x800xbf16>
    %c0_1 = arith.constant 0 : index
    %c0_2 = arith.constant 0 : index
    %1 = vector.load %arg2[%c0_1, %c0_2] : memref<800x32xbf16, #tpu.memory_space<vmem>>, vector<800x32xbf16>
    %cst = arith.constant dense<0.000000e+00> : vector<8x32xf32>
    %2 = tpu.matmul %0, %1, %cst {dimension_numbers = #tpu.dot_dimension_numbers<[1], [0], [0], [1], [0, 0, 1, 1], [], []>} : vector<8x800xbf16>, vector<800x32xbf16>, vector<8x32xf32> -> vector<8x32xf32>
    %c0_3 = arith.constant 0 : index
    %c0_4 = arith.constant 0 : index
    %3 = vector.load %arg3[%c0_3, %c0_4] : memref<1x32xf32, #tpu.memory_space<vmem>>, vector<1x32xf32>
    %4 = vector.broadcast %3 : vector<1x32xf32> to vector<8x32xf32>
    %5 = arith.addf %2, %4 : vector<8x32xf32>
    %cst_5 = arith.constant 0.000000e+00 : f32
    %6 = vector.broadcast %cst_5 : f32 to vector<8x32xf32>
    %7 = arith.maximumf %5, %6 : vector<8x32xf32>
    %8 = arith.truncf %7 : vector<8x32xf32> to vector<8x32xbf16>
    %c0_6 = arith.constant 0 : index
    %c0_7 = arith.constant 0 : index
    %9 = vector.load %arg4[%c0_6, %c0_7] : memref<8x32xbf16, #tpu.memory_space<vmem>>, vector<8x32xbf16>
    tpu.vector_store %arg4[%c0_6, %c0_7], %8 {strides = array<i32>} : memref<8x32xbf16, #tpu.memory_space<vmem>>, vector<8x32xbf16>,
    return
  }
  func.func @transform_0(%arg0: i32) -> (i32, i32) {
    %c0_i32 = arith.constant 0 : i32
    %c0_i32_0 = arith.constant 0 : i32
    return %arg0, %c0_i32 : i32, i32
  }
  func.func @transform_1(%arg0: i32) -> (i32, i32) {
    %c0_i32 = arith.constant 0 : i32
    %c0_i32_0 = arith.constant 0 : i32
    %c0_i32_1 = arith.constant 0 : i32
    return %c0_i32, %c0_i32_0 : i32, i32
  }
  func.func @transform_2(%arg0: i32) -> (i32, i32) {
    %c0_i32 = arith.constant 0 : i32
    %c0_i32_0 = arith.constant 0 : i32
    %c0_i32_1 = arith.constant 0 : i32
    return %c0_i32, %c0_i32_0 : i32, i32
  }
  func.func @transform_3(%arg0: i32) -> (i32, i32) {
    %c0_i32 = arith.constant 0 : i32
    %c0_i32_0 = arith.constant 0 : i32
    return %arg0, %c0_i32 : i32, i32
  }
}

module attributes {stable_mosaic.version = 11 : i64} {
  func.func @_fused_matmul_bias_kernel(%arg0: i32, %arg1: memref<2x128xbf16, #tpu.memory_space<vmem>>, %arg2: memref<128x2xbf16, #tpu.memory_space<vmem>>, %arg3: memref<1x2xf32, #tpu.memory_space<vmem>>, %arg4: memref<2x2xf32, #tpu.memory_space<vmem>>) attributes {dimension_semantics = [#tpu.dimension_semantics<parallel>], iteration_bounds = array<i64: 1>, scalar_prefetch = 0 : i64, scratch_operands = 0 : i64, tpu.core_type = #tpu.core_type<tc>, window_params = [{transform_indices = @transform_0, window_bounds = array<i64: 2, 128>}, {pipeline_mode = #tpu.pipeline_mode<synchronous>, transform_indices = @transform_1, window_bounds = array<i64: 128, 2>}, {pipeline_mode = #tpu.pipeline_mode<synchronous>, transform_indices = @transform_2, window_bounds = array<i64: 1, 2>}, {transform_indices = @transform_3, window_bounds = array<i64: 2, 2>}]} {
    %c0 = arith.constant 0 : index
    %c0_0 = arith.constant 0 : index
    %0 = vector.load %arg1[%c0, %c0_0] : memref<2x128xbf16, #tpu.memory_space<vmem>>, vector<2x128xbf16>
    %c0_1 = arith.constant 0 : index
    %c0_2 = arith.constant 0 : index
    %1 = vector.load %arg2[%c0_1, %c0_2] : memref<128x2xbf16, #tpu.memory_space<vmem>>, vector<128x2xbf16>
    %cst = arith.constant dense<0.000000e+00> : vector<2x2xf32>
    %2 = tpu.matmul %0, %1, %cst {dimension_numbers = #tpu.dot_dimension_numbers<[1], [0], [0], [1], [0, 0, 1, 1], [], []>} : vector<2x128xbf16>, vector<128x2xbf16>, vector<2x2xf32> -> vector<2x2xf32>
    %c0_3 = arith.constant 0 : index
    %c0_4 = arith.constant 0 : index
    %3 = vector.load %arg3[%c0_3, %c0_4] : memref<1x2xf32, #tpu.memory_space<vmem>>, vector<1x2xf32>
    %4 = vector.broadcast %3 : vector<1x2xf32> to vector<2x2xf32>
    %5 = arith.addf %2, %4 : vector<2x2xf32>
    %c0_5 = arith.constant 0 : index
    %c0_6 = arith.constant 0 : index
    %6 = vector.load %arg4[%c0_5, %c0_6] : memref<2x2xf32, #tpu.memory_space<vmem>>, vector<2x2xf32>
    tpu.vector_store %arg4[%c0_5, %c0_6], %5 {strides = array<i32>} : memref<2x2xf32, #tpu.memory_space<vmem>>, vector<2x2xf32>,
    return
  }
  func.func @transform_0(%arg0: i32) -> (i32, i32) {
    %c0_i32 = arith.constant 0 : i32
    %c0_i32_0 = arith.constant 0 : i32
    return %arg0, %c0_i32 : i32, i32
  }
  func.func @transform_1(%arg0: i32) -> (i32, i32) {
    %c0_i32 = arith.constant 0 : i32
    %c0_i32_0 = arith.constant 0 : i32
    %c0_i32_1 = arith.constant 0 : i32
    return %c0_i32, %c0_i32_0 : i32, i32
  }
  func.func @transform_2(%arg0: i32) -> (i32, i32) {
    %c0_i32 = arith.constant 0 : i32
    %c0_i32_0 = arith.constant 0 : i32
    %c0_i32_1 = arith.constant 0 : i32
    return %c0_i32, %c0_i32_0 : i32, i32
  }
  func.func @transform_3(%arg0: i32) -> (i32, i32) {
    %c0_i32 = arith.constant 0 : i32
    %c0_i32_0 = arith.constant 0 : i32
    return %arg0, %c0_i32 : i32, i32
  }
}

</mosaic_0001>

<bundles_post_ra>
// kernel: dqn_forward.4
= control target key start
LH: loop header
LB: loop body
LE: loop exit
PB: predicated region body
PF: predicated region fallthrough
CT: control target
= control target key end

     0   :  { %s1805_s12 = smov 0   ;;  %s1807_s13 = smov 0   ;;  %s2237_s0 = inlined_call_operand.vmem [shape: bf16[648,75], index: 0, kind: input, shape index: {}]   ;;  %s2238_s1 = inlined_call_operand.vmem [shape: bf16[75,16], index: 1, kind: input, shape index: {}]   ;;  %s2239_s2 = inlined_call_operand.vmem [shape: f32[1,16], index: 2, kind: input, shape index: {}]   ;;  %s2240_s3 = inlined_call_operand.vmem [shape: bf16[648,16], index: 3, kind: output, shape index: {}]  }
   0x1   :  { %s1809_s14 = smov 0  }
   0x2 LB: > { %s1818_s15 = sadd.s32 4294967295, %s1748_s14   ;;  %s1820_s16 = sadd.s32 1, %s1748_s14   ;;  %s1748_s14 = sphi %s1809_s14, %s2247_s14   ;;  %s1744_s13 = sphi %s1807_s13, %s2246_s13   ;;  %s1740_s12 = sphi %s1805_s12, %s2245_s12  }
   0x3   : > { %s85_s17 = ssub.s32 %s1748_s14, %s1820_s16  ;;  %s88_s18 = sadd.s32 1, %s1744_s13 }
   0x4   : > { %p86_p0 = scmp.eq.s32.totalorder %s85_s17, 0  ;;  %p98_p1 = scmp.ne.s32.totalorder %s1744_s13, %s1740_s12 }
   0x5   : > { %p99_p2 = scmp.eq.s32.totalorder %s1818_s15, 1  ;;  %p1294_p3 = scmp.ge.s32.totalorder %s1748_s14, 1 }
   0x6   : > { %s1828_s19 = scalar_select %p86_p0, %s1744_s13, %s88_s18  }
   0x7   : > { %p1830_p4 = por %p99_p2, %p98_p1  ;;  %p146_p5 = scmp.lt.s32.totalorder %s1748_s14, 3 }
   0x9   : > { %p147_p6 = pnand %p1294_p3, %p146_p5 }
   0xa   : > { %v1664_v0 = vld [vmem:[%s2238_s1] sm:$0xff] (!%p147_p6)   ;;  %v1782_v1 = vmov (!%p147_p6), 0.0   ;;  %v1665_v2 = vld [vmem:[%s2238_s1 + $0x8] sm:$0xff] (!%p147_p6)   ;;  %vm450_vm0 = vcmask (!%p147_p6), 1044480   ;;  %s1845_s25 = smul.u32 (!%p147_p6), 42, %s1818_s15  ;;  %v1666_v3 = vld [vmem:[%s2238_s1 + $0x10] sm:$0xff] (!%p147_p6)  }
   0xb   : > { %150 = sbr.rel (%p147_p6) target bundleno = 421 (0x1a5), region = 32  ;;  %1467 = vmatprep.subr.bf16.mxu0 (!%p147_p6), %v1782_v1  ;;  %1561 = vmatprep.subr.bf16.mxu1 (!%p147_p6), %v1782_v1  ;;  %vm451_vm1 = vcmask (!%p147_p6), 1045504   ;;  %v1783_v4 = vmov (!%p147_p6), 65535   ;;  %vm1784_vm2 = vmmov (!%p147_p6), 0   ;;  %v1667_v6 = vld [vmem:[%s2238_s1 + $0x18] sm:$0xff] (!%p147_p6)   ;;  %vm386_vm3 = vcmask (!%p147_p6), 613376  }
   0xc   : > { %1468 = vmatpush3.bf16.msra.mxu0 (!%p147_p6), %v1664_v0  ;;  %1566 = vmatpush3.bf16.msra.mxu1 (!%p147_p6), %v1664_v0  ;;  %p178_p7 = scmp.lt.s32.totalorder (!%p147_p6), %s1845_s25, 80  ;;  %v452_v5 = vsel (!%p147_p6), %vm450_vm0, 4294967295, %v1783_v4  ;;  %v1668_v7 = vld [vmem:[%s2238_s1 + $0x20] sm:$0x3f] (!%p147_p6)   ;;  %s170_s10 = sand.u32 (!%p147_p6), 1, %s1740_s12   ;;  %vm868_vm4 = vcmask (!%p147_p6), 125952  }
   0xd   : > { %1469 = vmatprep.subr.bf16.mxu0 (!%p147_p6), %v1782_v1  ;;  %1562 = vmatprep.subr.bf16.mxu1 (!%p147_p6), %v1782_v1  ;;  %v453_v8 = vsel (!%p147_p6), %vm451_vm1, %v452_v5, 0  ;;  %v1957_v31 = vld [vmem:[%s2239_s2] ss:$0 sm:$0xff] (!%p147_p6)  ;;  %s1571_s17 = smul.u32 (!%p147_p6), 168, %s170_s10 }
   0xe   : > { %1477 = vmatprep.mubr.msk.bf16.mxu0 (!%p147_p6), %vm1784_vm2, %v1782_v1  ;;  %1521 = vmatprep.mubr.msk.bf16.mxu1 (!%p147_p6), %vm1784_vm2, %v1782_v1  ;;  %v455_v9 = vand.u32 (!%p147_p6), %v1668_v7, %v453_v8 }
   0xf   : > { %s1963_s12 = scalar_lea.vmem (!%p147_p6), [#allocation2], %s1571_s17  }
  0x10   : > { %1470 = vmatpush3.bf16.msra.mxu0 (!%p147_p6), %v1665_v2  ;;  %1567 = vmatpush3.bf16.msra.mxu1 (!%p147_p6), %v1665_v2 }
  0x11   : > { %1471 = vmatprep.subr.bf16.mxu0 (!%p147_p6), %v1782_v1  ;;  %1563 = vmatprep.subr.bf16.mxu1 (!%p147_p6), %v1782_v1 }
  0x12   : > { %s179_s28 = scalar_select %p178_p7, %s1845_s25, 80 }
  0x13   : > { %s919_s18 = ssub.s32 (%p1830_p4), 81, %s1845_s25  ;;  %s1440_s21 = smul.u32 (%p1830_p4), 168, %s1818_s15 }
  0x14   : > { %1472 = vmatpush3.bf16.msra.mxu0 %v1666_v3  ;;  %1568 = vmatpush3.bf16.msra.mxu1 %v1666_v3  ;;  %s1295_s6 = sshll.u32 %s179_s28, 2  ;;  %p920_p8 = scmp.lt.s32.totalorder (%p1830_p4), %s919_s18, 42 }
  0x15   : > { %1473 = vmatprep.subr.bf16.mxu0 %v1782_v1  ;;  %1564 = vmatprep.subr.bf16.mxu1 %v1782_v1  ;;  %s1869_s9 = scalar_lea.vmem %s2237_s0, %s1295_s6  ;;  %s2094_s24 = scalar_lea.vmem (%p1830_p4), %s2240_s3, %s1440_s21  }
  0x16   : > { %v1669_v10 = vld [vmem:[%s1869_s9] sm:$0xff]   ;;  %v1670_v11 = vld [vmem:[%s1869_s9 + $0x58] sm:$0xff]   ;;  %v1671_v12 = vld [vmem:[%s1869_s9 + $0x8] sm:$0xff]  }
  0x17   : > { %v1672_v13 = vld [vmem:[%s1869_s9 + $0x60] sm:$0xff]   ;;  %v1673_v14 = vld [vmem:[%s1869_s9 + $0x10] sm:$0xff]   ;;  %v1674_v15 = vld [vmem:[%s1869_s9 + $0x68] sm:$0xff]  }
  0x18   : > { %1474 = vmatpush3.bf16.msra.mxu0 %v1667_v6  ;;  %1569 = vmatpush3.bf16.msra.mxu1 %v1667_v6  ;;  %v1675_v16 = vld [vmem:[%s1869_s9 + $0x18] sm:$0xff]   ;;  %v1676_v17 = vld [vmem:[%s1869_s9 + $0x70] sm:$0xff]   ;;  %v1677_v18 = vld [vmem:[%s1869_s9 + $0x20] sm:$0xff]  }
  0x19   : > { %1475 = vmatprep.subr.bf16.mxu0 %v1782_v1  ;;  %1565 = vmatprep.subr.bf16.mxu1 %v1782_v1  ;;  %v1678_v19 = vld [vmem:[%s1869_s9 + $0x78] sm:$0xff]   ;;  %v1679_v20 = vld [vmem:[%s1869_s9 + $0x28] sm:$0xff]   ;;  %v1680_v21 = vld [vmem:[%s1869_s9 + $0x80] sm:$0xff]  }
  0x1a   : > { %v1681_v22 = vld [vmem:[%s1869_s9 + $0x30] sm:$0xff]   ;;  %v1682_v23 = vld [vmem:[%s1869_s9 + $0x88] sm:$0xff]   ;;  %v1683_v24 = vld [vmem:[%s1869_s9 + $0x38] sm:$0xff]  }
  0x1b   : > { %v1684_v25 = vld [vmem:[%s1869_s9 + $0x90] sm:$0xff]   ;;  %v1685_v26 = vld [vmem:[%s1869_s9 + $0x40] sm:$0xff]   ;;  %v1686_v27 = vld [vmem:[%s1869_s9 + $0x98] sm:$0xff]  }
  0x1c   : > { %1476 = vmatpush3.bf16.msra.mxu0 %v455_v9  ;;  %1570 = vmatpush3.bf16.msra.mxu1 %v455_v9  ;;  %v1687_v28 = vld [vmem:[%s1869_s9 + $0x48] sm:$0xff]   ;;  %v1688_v29 = vld [vmem:[%s1869_s9 + $0xa0] sm:$0xff]   ;;  %v1689_v30 = vld [vmem:[%s1869_s9 + $0x50] sm:$0xff]  }
  0x1f   : > { %1478 = vmatmul.mubr.msk.bf16.vlgmr.msra.gmra.mrb[0].mxu0 %vm386_vm3, %v1669_v10  ;;  %1522 = vmatmul.mubr.msk.bf16.vlgmr.msra.gmra.mrb[0].mxu1 %vm386_vm3, %v1670_v11 }
  0x20   : > { %1481 = vmatprep.mubr.msk.bf16.mxu0 %vm1784_vm2, %v1782_v1  ;;  %1525 = vmatprep.mubr.msk.bf16.mxu1 %vm1784_vm2, %v1782_v1 }
  0x27   : > { %1482 = vmatmul.mubr.msk.bf16.gmra.mrb[4].mxu0 %vm386_vm3, %v1671_v12  ;;  %1526 = vmatmul.mubr.msk.bf16.gmra.mrb[4].mxu1 %vm386_vm3, %v1672_v13 }
  0x28   : > { %1485 = vmatprep.mubr.msk.bf16.mxu0 %vm1784_vm2, %v1782_v1  ;;  %1529 = vmatprep.mubr.msk.bf16.mxu1 %vm1784_vm2, %v1782_v1 }
  0x2f   : > { %1486 = vmatmul.mubr.msk.bf16.gmra.mrb[8].mxu0 %vm386_vm3, %v1673_v14  ;;  %1530 = vmatmul.mubr.msk.bf16.gmra.mrb[8].mxu1 %vm386_vm3, %v1674_v15 }
  0x30   : > { %1489 = vmatprep.mubr.msk.bf16.mxu0 %vm1784_vm2, %v1782_v1  ;;  %1533 = vmatprep.mubr.msk.bf16.mxu1 %vm1784_vm2, %v1782_v1 }
  0x37   : > { %1490 = vmatmul.mubr.msk.bf16.gmra.mrb[12].mxu0 %vm386_vm3, %v1675_v16  ;;  %1534 = vmatmul.mubr.msk.bf16.gmra.mrb[12].mxu1 %vm386_vm3, %v1676_v17 }
  0x38   : > { %1493 = vmatprep.mubr.msk.bf16.mxu0 %vm1784_vm2, %v1782_v1  ;;  %1537 = vmatprep.mubr.msk.bf16.mxu1 %vm1784_vm2, %v1782_v1 }
  0x3f   : > { %1494 = vmatmul.mubr.msk.bf16.gmra.mrb[16].mxu0 %vm386_vm3, %v1677_v18  ;;  %1538 = vmatmul.mubr.msk.bf16.gmra.mrb[16].mxu1 %vm386_vm3, %v1678_v19 }
  0x40   : > { %1497 = vmatprep.mubr.msk.bf16.mxu0 %vm1784_vm2, %v1782_v1  ;;  %1541 = vmatprep.mubr.msk.bf16.mxu1 %vm1784_vm2, %v1782_v1 }
  0x47   : > { %1498 = vmatmul.mubr.msk.bf16.gmra.mrb[20].mxu0 %vm386_vm3, %v1679_v20  ;;  %1542 = vmatmul.mubr.msk.bf16.gmra.mrb[20].mxu1 %vm386_vm3, %v1680_v21 }
  0x48   : > { %1501 = vmatprep.mubr.msk.bf16.mxu0 %vm1784_vm2, %v1782_v1  ;;  %1545 = vmatprep.mubr.msk.bf16.mxu1 %vm1784_vm2, %v1782_v1 }
  0x4f   : > { %1502 = vmatmul.mubr.msk.bf16.gmra.mrb[24].mxu0 %vm386_vm3, %v1681_v22  ;;  %1546 = vmatmul.mubr.msk.bf16.gmra.mrb[24].mxu1 %vm386_vm3, %v1682_v23 }
  0x50   : > { %1505 = vmatprep.mubr.msk.bf16.mxu0 %vm1784_vm2, %v1782_v1  ;;  %1549 = vmatprep.mubr.msk.bf16.mxu1 %vm1784_vm2, %v1782_v1 }
  0x57   : > { %1506 = vmatmul.mubr.msk.bf16.gmra.mrb[28].mxu0 %vm386_vm3, %v1683_v24  ;;  %1550 = vmatmul.mubr.msk.bf16.gmra.mrb[28].mxu1 %vm386_vm3, %v1684_v25 }
  0x58   : > { %1509 = vmatprep.mubr.msk.bf16.mxu0 %vm1784_vm2, %v1782_v1  ;;  %1553 = vmatprep.mubr.msk.bf16.mxu1 %vm1784_vm2, %v1782_v1 }
  0x5f   : > { %1510 = vmatmul.mubr.msk.bf16.gmra.mrb[32].mxu0 %vm386_vm3, %v1685_v26  ;;  %1554 = vmatmul.mubr.msk.bf16.gmra.mrb[32].mxu1 %vm386_vm3, %v1686_v27 }
  0x60   : > { %1513 = vmatprep.mubr.msk.bf16.mxu0 %vm1784_vm2, %v1782_v1  ;;  %1557 = vmatprep.mubr.msk.bf16.mxu1 %vm1784_vm2, %v1782_v1 }
  0x67   : > { %1514 = vmatmul.mubr.msk.bf16.gmra.mrb[36].mxu0 %vm386_vm3, %v1687_v28  ;;  %1558 = vmatmul.mubr.msk.bf16.gmra.mrb[36].mxu1 %vm386_vm3, %v1688_v29 }
  0x68   : > { %1517 = vmatprep.mubr.msk.bf16.mxu0 %vm1784_vm2, %v1782_v1 }
  0x6f   : > { %1518 = vmatmul.mubr.msk.bf16.gmra.mrb[40].mxu0 %vm386_vm3, %v1689_v30 }
  0xf2   : > { %v491_v32 = vpop.f32.mrb[0].mxu0  ;;  %v579_v33 = vpop.f32.mrb[0].mxu1 }
  0xf3   : > { %v492_v34 = vadd.f32 %v1957_v31, %v491_v32  ;;  %v1479_v35 = vpop.f32.mrb[1].mxu0  ;;  %v580_v36 = vadd.f32 %v1957_v31, %v579_v33  ;;  %v1523_v37 = vpop.f32.mrb[1].mxu1 }
  0xf4   : > { %v494_v38 = vpop.f32.mrb[2].mxu0  ;;  %v582_v39 = vpop.f32.mrb[2].mxu1 }
  0xf5   : > { %v658_v40 = vmax.f32 %v492_v34, 0.0  ;;  %v495_v41 = vadd.f32 %v1957_v31, %v494_v38  ;;  %v1480_v42 = vpop.f32.mrb[3].mxu0  ;;  %v680_v43 = vmax.f32 %v580_v36, 0.0  ;;  %v583_v44 = vadd.f32 %v1957_v31, %v582_v39  ;;  %v1524_v45 = vpop.f32.mrb[3].mxu1 }
  0xf7   : > { %v1398_v46 = vpack.c.bf16 %v658_v40, %v658_v40  ;;  %v659_v47 = vmax.f32 %v495_v41, 0.0  ;;  %v1420_v48 = vpack.c.bf16 %v680_v43, %v680_v43  ;;  %v681_v49 = vmax.f32 %v583_v44, 0.0 }
  0xf9   : > { %869 = vst.msk [vmem:[%s1963_s12] sm:$0xf] %vm868_vm4, %v1398_v46  ;;  %v1399_v50 = vpack.c.bf16 %v659_v47, %v659_v47  ;;  %891 = vst.msk [vmem:[%s1963_s12 + $0x58] sm:$0xf] %vm868_vm4, %v1420_v48  ;;  %v1421_v51 = vpack.c.bf16 %v681_v49, %v681_v49 }
  0xfa   : > { %v499_v52 = vpop.f32.mrb[4].mxu0  ;;  %v587_v53 = vpop.f32.mrb[4].mxu1 }
  0xfb   : > { %870 = vst.msk [vmem:[%s1963_s12 + $0x4] sm:$0xf] %vm868_vm4, %v1399_v50  ;;  %892 = vst.msk [vmem:[%s1963_s12 + $0x5c] sm:$0xf] %vm868_vm4, %v1421_v51  ;;  %v500_v54 = vadd.f32 %v1957_v31, %v499_v52  ;;  %v1483_v55 = vpop.f32.mrb[5].mxu0  ;;  %v588_v56 = vadd.f32 %v1957_v31, %v587_v53  ;;  %v1527_v57 = vpop.f32.mrb[5].mxu1 }
  0xfc   : > { %v502_v58 = vpop.f32.mrb[6].mxu0  ;;  %v590_v59 = vpop.f32.mrb[6].mxu1 }
  0xfd   : > { %v660_v60 = vmax.f32 %v500_v54, 0.0  ;;  %v503_v61 = vadd.f32 %v1957_v31, %v502_v58  ;;  %v1484_v62 = vpop.f32.mrb[7].mxu0  ;;  %v682_v63 = vmax.f32 %v588_v56, 0.0  ;;  %v591_v0 = vadd.f32 %v1957_v31, %v590_v59  ;;  %v1528_v1 = vpop.f32.mrb[7].mxu1 }
  0xff   : > { %v1400_v2 = vpack.c.bf16 %v660_v60, %v660_v60  ;;  %v661_v3 = vmax.f32 %v503_v61, 0.0  ;;  %v1422_v4 = vpack.c.bf16 %v682_v63, %v682_v63  ;;  %v683_v5 = vmax.f32 %v591_v0, 0.0 }
 0x101   : > { %871 = vst.msk [vmem:[%s1963_s12 + $0x8] sm:$0xf] %vm868_vm4, %v1400_v2  ;;  %v1401_v6 = vpack.c.bf16 %v661_v3, %v661_v3  ;;  %893 = vst.msk [vmem:[%s1963_s12 + $0x60] sm:$0xf] %vm868_vm4, %v1422_v4  ;;  %v1423_v7 = vpack.c.bf16 %v683_v5, %v683_v5 }
 0x102   : > { %v507_v8 = vpop.f32.mrb[8].mxu0  ;;  %v595_v9 = vpop.f32.mrb[8].mxu1 }
 0x103   : > { %872 = vst.msk [vmem:[%s1963_s12 + $0xc] sm:$0xf] %vm868_vm4, %v1401_v6  ;;  %894 = vst.msk [vmem:[%s1963_s12 + $0x64] sm:$0xf] %vm868_vm4, %v1423_v7  ;;  %v508_v10 = vadd.f32 %v1957_v31, %v507_v8  ;;  %v1487_v11 = vpop.f32.mrb[9].mxu0  ;;  %v596_v12 = vadd.f32 %v1957_v31, %v595_v9  ;;  %v1531_v13 = vpop.f32.mrb[9].mxu1 }
 0x104   : > { %v510_v14 = vpop.f32.mrb[10].mxu0  ;;  %v598_v15 = vpop.f32.mrb[10].mxu1 }
 0x105   : > { %v662_v16 = vmax.f32 %v508_v10, 0.0  ;;  %v511_v17 = vadd.f32 %v1957_v31, %v510_v14  ;;  %v1488_v18 = vpop.f32.mrb[11].mxu0  ;;  %v684_v19 = vmax.f32 %v596_v12, 0.0  ;;  %v599_v20 = vadd.f32 %v1957_v31, %v598_v15  ;;  %v1532_v21 = vpop.f32.mrb[11].mxu1 }
 0x107   : > { %v1402_v22 = vpack.c.bf16 %v662_v16, %v662_v16  ;;  %v663_v23 = vmax.f32 %v511_v17, 0.0  ;;  %v1424_v24 = vpack.c.bf16 %v684_v19, %v684_v19  ;;  %v685_v25 = vmax.f32 %v599_v20, 0.0 }
 0x109   : > { %873 = vst.msk [vmem:[%s1963_s12 + $0x10] sm:$0xf] %vm868_vm4, %v1402_v22  ;;  %v1403_v26 = vpack.c.bf16 %v663_v23, %v663_v23  ;;  %895 = vst.msk [vmem:[%s1963_s12 + $0x68] sm:$0xf] %vm868_vm4, %v1424_v24  ;;  %v1425_v27 = vpack.c.bf16 %v685_v25, %v685_v25 }
 0x10a   : > { %v515_v28 = vpop.f32.mrb[12].mxu0  ;;  %v603_v29 = vpop.f32.mrb[12].mxu1 }
 0x10b   : > { %874 = vst.msk [vmem:[%s1963_s12 + $0x14] sm:$0xf] %vm868_vm4, %v1403_v26  ;;  %896 = vst.msk [vmem:[%s1963_s12 + $0x6c] sm:$0xf] %vm868_vm4, %v1425_v27  ;;  %v516_v30 = vadd.f32 %v1957_v31, %v515_v28  ;;  %v1491_v32 = vpop.f32.mrb[13].mxu0  ;;  %v604_v33 = vadd.f32 %v1957_v31, %v603_v29  ;;  %v1535_v34 = vpop.f32.mrb[13].mxu1 }
 0x10c   : > { %v518_v35 = vpop.f32.mrb[14].mxu0  ;;  %v606_v36 = vpop.f32.mrb[14].mxu1 }
 0x10d   : > { %v664_v37 = vmax.f32 %v516_v30, 0.0  ;;  %v519_v38 = vadd.f32 %v1957_v31, %v518_v35  ;;  %v1492_v39 = vpop.f32.mrb[15].mxu0  ;;  %v686_v40 = vmax.f32 %v604_v33, 0.0  ;;  %v607_v41 = vadd.f32 %v1957_v31, %v606_v36  ;;  %v1536_v42 = vpop.f32.mrb[15].mxu1 }
 0x10f   : > { %v1404_v43 = vpack.c.bf16 %v664_v37, %v664_v37  ;;  %v665_v44 = vmax.f32 %v519_v38, 0.0  ;;  %v1426_v45 = vpack.c.bf16 %v686_v40, %v686_v40  ;;  %v687_v46 = vmax.f32 %v607_v41, 0.0 }
 0x111   : > { %875 = vst.msk [vmem:[%s1963_s12 + $0x18] sm:$0xf] %vm868_vm4, %v1404_v43  ;;  %v1405_v47 = vpack.c.bf16 %v665_v44, %v665_v44  ;;  %897 = vst.msk [vmem:[%s1963_s12 + $0x70] sm:$0xf] %vm868_vm4, %v1426_v45  ;;  %v1427_v48 = vpack.c.bf16 %v687_v46, %v687_v46 }
 0x112   : > { %v523_v49 = vpop.f32.mrb[16].mxu0  ;;  %v611_v50 = vpop.f32.mrb[16].mxu1 }
 0x113   : > { %876 = vst.msk [vmem:[%s1963_s12 + $0x1c] sm:$0xf] %vm868_vm4, %v1405_v47  ;;  %898 = vst.msk [vmem:[%s1963_s12 + $0x74] sm:$0xf] %vm868_vm4, %v1427_v48  ;;  %v524_v51 = vadd.f32 %v1957_v31, %v523_v49  ;;  %v1495_v52 = vpop.f32.mrb[17].mxu0  ;;  %v612_v53 = vadd.f32 %v1957_v31, %v611_v50  ;;  %v1539_v54 = vpop.f32.mrb[17].mxu1 }
 0x114   : > { %v526_v55 = vpop.f32.mrb[18].mxu0  ;;  %v614_v56 = vpop.f32.mrb[18].mxu1 }
 0x115   : > { %v666_v57 = vmax.f32 %v524_v51, 0.0  ;;  %v527_v58 = vadd.f32 %v1957_v31, %v526_v55  ;;  %v1496_v59 = vpop.f32.mrb[19].mxu0  ;;  %v688_v60 = vmax.f32 %v612_v53, 0.0  ;;  %v615_v61 = vadd.f32 %v1957_v31, %v614_v56  ;;  %v1540_v62 = vpop.f32.mrb[19].mxu1 }
 0x117   : > { %v1406_v63 = vpack.c.bf16 %v666_v57, %v666_v57  ;;  %v667_v0 = vmax.f32 %v527_v58, 0.0  ;;  %v1428_v1 = vpack.c.bf16 %v688_v60, %v688_v60  ;;  %v689_v2 = vmax.f32 %v615_v61, 0.0 }
 0x119   : > { %877 = vst.msk [vmem:[%s1963_s12 + $0x20] sm:$0xf] %vm868_vm4, %v1406_v63  ;;  %v1407_v3 = vpack.c.bf16 %v667_v0, %v667_v0  ;;  %899 = vst.msk [vmem:[%s1963_s12 + $0x78] sm:$0xf] %vm868_vm4, %v1428_v1  ;;  %v1429_v4 = vpack.c.bf16 %v689_v2, %v689_v2 }
 0x11a   : > { %v531_v5 = vpop.f32.mrb[20].mxu0  ;;  %v619_v6 = vpop.f32.mrb[20].mxu1 }
 0x11b   : > { %878 = vst.msk [vmem:[%s1963_s12 + $0x24] sm:$0xf] %vm868_vm4, %v1407_v3  ;;  %900 = vst.msk [vmem:[%s1963_s12 + $0x7c] sm:$0xf] %vm868_vm4, %v1429_v4  ;;  %v532_v7 = vadd.f32 %v1957_v31, %v531_v5  ;;  %v1499_v8 = vpop.f32.mrb[21].mxu0  ;;  %v620_v9 = vadd.f32 %v1957_v31, %v619_v6  ;;  %v1543_v10 = vpop.f32.mrb[21].mxu1 }
 0x11c   : > { %v534_v11 = vpop.f32.mrb[22].mxu0  ;;  %v622_v12 = vpop.f32.mrb[22].mxu1 }
 0x11d   : > { %v668_v13 = vmax.f32 %v532_v7, 0.0  ;;  %v535_v14 = vadd.f32 %v1957_v31, %v534_v11  ;;  %v1500_v15 = vpop.f32.mrb[23].mxu0  ;;  %v690_v16 = vmax.f32 %v620_v9, 0.0  ;;  %v623_v17 = vadd.f32 %v1957_v31, %v622_v12  ;;  %v1544_v18 = vpop.f32.mrb[23].mxu1 }
 0x11f   : > { %v1408_v19 = vpack.c.bf16 %v668_v13, %v668_v13  ;;  %v669_v20 = vmax.f32 %v535_v14, 0.0  ;;  %v1430_v21 = vpack.c.bf16 %v690_v16, %v690_v16  ;;  %v691_v22 = vmax.f32 %v623_v17, 0.0 }
 0x121   : > { %879 = vst.msk [vmem:[%s1963_s12 + $0x28] sm:$0xf] %vm868_vm4, %v1408_v19  ;;  %v1409_v23 = vpack.c.bf16 %v669_v20, %v669_v20  ;;  %901 = vst.msk [vmem:[%s1963_s12 + $0x80] sm:$0xf] %vm868_vm4, %v1430_v21  ;;  %v1431_v24 = vpack.c.bf16 %v691_v22, %v691_v22 }
 0x122   : > { %v539_v25 = vpop.f32.mrb[24].mxu0  ;;  %v627_v26 = vpop.f32.mrb[24].mxu1 }
 0x123   : > { %880 = vst.msk [vmem:[%s1963_s12 + $0x2c] sm:$0xf] %vm868_vm4, %v1409_v23  ;;  %902 = vst.msk [vmem:[%s1963_s12 + $0x84] sm:$0xf] %vm868_vm4, %v1431_v24  ;;  %v540_v27 = vadd.f32 %v1957_v31, %v539_v25  ;;  %v1503_v28 = vpop.f32.mrb[25].mxu0  ;;  %v628_v29 = vadd.f32 %v1957_v31, %v627_v26  ;;  %v1547_v30 = vpop.f32.mrb[25].mxu1 }
 0x124   : > { %v542_v32 = vpop.f32.mrb[26].mxu0  ;;  %v630_v33 = vpop.f32.mrb[26].mxu1 }
 0x125   : > { %v670_v34 = vmax.f32 %v540_v27, 0.0  ;;  %v543_v35 = vadd.f32 %v1957_v31, %v542_v32  ;;  %v1504_v36 = vpop.f32.mrb[27].mxu0  ;;  %v692_v37 = vmax.f32 %v628_v29, 0.0  ;;  %v631_v38 = vadd.f32 %v1957_v31, %v630_v33  ;;  %v1548_v39 = vpop.f32.mrb[27].mxu1 }
 0x127   : > { %v1410_v40 = vpack.c.bf16 %v670_v34, %v670_v34  ;;  %v671_v41 = vmax.f32 %v543_v35, 0.0  ;;  %v1432_v42 = vpack.c.bf16 %v692_v37, %v692_v37  ;;  %v693_v43 = vmax.f32 %v631_v38, 0.0 }
 0x129   : > { %881 = vst.msk [vmem:[%s1963_s12 + $0x30] sm:$0xf] %vm868_vm4, %v1410_v40  ;;  %v1411_v44 = vpack.c.bf16 %v671_v41, %v671_v41  ;;  %903 = vst.msk [vmem:[%s1963_s12 + $0x88] sm:$0xf] %vm868_vm4, %v1432_v42  ;;  %v1433_v45 = vpack.c.bf16 %v693_v43, %v693_v43 }
 0x12a   : > { %v547_v46 = vpop.f32.mrb[28].mxu0  ;;  %v635_v47 = vpop.f32.mrb[28].mxu1 }
 0x12b   : > { %882 = vst.msk [vmem:[%s1963_s12 + $0x34] sm:$0xf] %vm868_vm4, %v1411_v44  ;;  %904 = vst.msk [vmem:[%s1963_s12 + $0x8c] sm:$0xf] %vm868_vm4, %v1433_v45  ;;  %v548_v48 = vadd.f32 %v1957_v31, %v547_v46  ;;  %v1507_v49 = vpop.f32.mrb[29].mxu0  ;;  %v636_v50 = vadd.f32 %v1957_v31, %v635_v47  ;;  %v1551_v51 = vpop.f32.mrb[29].mxu1 }
 0x12c   : > { %v550_v52 = vpop.f32.mrb[30].mxu0  ;;  %v638_v53 = vpop.f32.mrb[30].mxu1 }
 0x12d   : > { %v672_v54 = vmax.f32 %v548_v48, 0.0  ;;  %v551_v55 = vadd.f32 %v1957_v31, %v550_v52  ;;  %v1508_v56 = vpop.f32.mrb[31].mxu0  ;;  %v694_v57 = vmax.f32 %v636_v50, 0.0  ;;  %v639_v58 = vadd.f32 %v1957_v31, %v638_v53  ;;  %v1552_v59 = vpop.f32.mrb[31].mxu1 }
 0x12f   : > { %v1412_v60 = vpack.c.bf16 %v672_v54, %v672_v54  ;;  %v673_v61 = vmax.f32 %v551_v55, 0.0  ;;  %v1434_v62 = vpack.c.bf16 %v694_v57, %v694_v57  ;;  %v695_v63 = vmax.f32 %v639_v58, 0.0 }
 0x131   : > { %883 = vst.msk [vmem:[%s1963_s12 + $0x38] sm:$0xf] %vm868_vm4, %v1412_v60  ;;  %v1413_v0 = vpack.c.bf16 %v673_v61, %v673_v61  ;;  %905 = vst.msk [vmem:[%s1963_s12 + $0x90] sm:$0xf] %vm868_vm4, %v1434_v62  ;;  %v1435_v1 = vpack.c.bf16 %v695_v63, %v695_v63 }
 0x132   : > { %v555_v2 = vpop.f32.mrb[32].mxu0  ;;  %v643_v3 = vpop.f32.mrb[32].mxu1 }
 0x133   : > { %884 = vst.msk [vmem:[%s1963_s12 + $0x3c] sm:$0xf] %vm868_vm4, %v1413_v0  ;;  %906 = vst.msk [vmem:[%s1963_s12 + $0x94] sm:$0xf] %vm868_vm4, %v1435_v1  ;;  %v556_v4 = vadd.f32 %v1957_v31, %v555_v2  ;;  %v1511_v5 = vpop.f32.mrb[33].mxu0  ;;  %v644_v6 = vadd.f32 %v1957_v31, %v643_v3  ;;  %v1555_v7 = vpop.f32.mrb[33].mxu1 }
 0x134   : > { %v558_v8 = vpop.f32.mrb[34].mxu0  ;;  %v646_v9 = vpop.f32.mrb[34].mxu1 }
 0x135   : > { %v674_v10 = vmax.f32 %v556_v4, 0.0  ;;  %v559_v11 = vadd.f32 %v1957_v31, %v558_v8  ;;  %v1512_v12 = vpop.f32.mrb[35].mxu0  ;;  %v696_v13 = vmax.f32 %v644_v6, 0.0  ;;  %v647_v14 = vadd.f32 %v1957_v31, %v646_v9  ;;  %v1556_v15 = vpop.f32.mrb[35].mxu1 }
 0x137   : > { %v1414_v16 = vpack.c.bf16 %v674_v10, %v674_v10  ;;  %v675_v17 = vmax.f32 %v559_v11, 0.0  ;;  %v1436_v18 = vpack.c.bf16 %v696_v13, %v696_v13  ;;  %v697_v19 = vmax.f32 %v647_v14, 0.0 }
 0x139   : > { %885 = vst.msk [vmem:[%s1963_s12 + $0x40] sm:$0xf] %vm868_vm4, %v1414_v16  ;;  %v1415_v20 = vpack.c.bf16 %v675_v17, %v675_v17  ;;  %907 = vst.msk [vmem:[%s1963_s12 + $0x98] sm:$0xf] %vm868_vm4, %v1436_v18  ;;  %v1437_v21 = vpack.c.bf16 %v697_v19, %v697_v19 }
 0x13a   : > { %v563_v22 = vpop.f32.mrb[36].mxu0  ;;  %v651_v23 = vpop.f32.mrb[36].mxu1 }
 0x13b   : > { %886 = vst.msk [vmem:[%s1963_s12 + $0x44] sm:$0xf] %vm868_vm4, %v1415_v20  ;;  %908 = vst.msk [vmem:[%s1963_s12 + $0x9c] sm:$0xf] %vm868_vm4, %v1437_v21  ;;  %v564_v24 = vadd.f32 %v1957_v31, %v563_v22  ;;  %v1515_v25 = vpop.f32.mrb[37].mxu0  ;;  %v652_v26 = vadd.f32 %v1957_v31, %v651_v23  ;;  %v1559_v27 = vpop.f32.mrb[37].mxu1 }
 0x13c   : > { %v566_v28 = vpop.f32.mrb[38].mxu0  ;;  %v654_v29 = vpop.f32.mrb[38].mxu1 }
 0x13d   : > { %v676_v30 = vmax.f32 %v564_v24, 0.0  ;;  %v567_v32 = vadd.f32 %v1957_v31, %v566_v28  ;;  %v1516_v33 = vpop.f32.mrb[39].mxu0  ;;  %v698_v34 = vmax.f32 %v652_v26, 0.0  ;;  %v655_v35 = vadd.f32 %v1957_v31, %v654_v29  ;;  %v1560_v36 = vpop.f32.mrb[39].mxu1 }
 0x13f   : > { %v1416_v37 = vpack.c.bf16 %v676_v30, %v676_v30  ;;  %v677_v38 = vmax.f32 %v567_v32, 0.0  ;;  %v1438_v39 = vpack.c.bf16 %v698_v34, %v698_v34  ;;  %v699_v40 = vmax.f32 %v655_v35, 0.0 }
 0x141   : > { %887 = vst.msk [vmem:[%s1963_s12 + $0x48] sm:$0xf] %vm868_vm4, %v1416_v37  ;;  %v1417_v41 = vpack.c.bf16 %v677_v38, %v677_v38  ;;  %909 = vst.msk [vmem:[%s1963_s12 + $0xa0] sm:$0xf] %vm868_vm4, %v1438_v39  ;;  %v1439_v42 = vpack.c.bf16 %v699_v40, %v699_v40 }
 0x142   : > { %v571_v43 = vpop.f32.mrb[40].mxu0 }
 0x143   : > { %888 = vst.msk [vmem:[%s1963_s12 + $0x4c] sm:$0xf] %vm868_vm4, %v1417_v41  ;;  %910 = vst.msk [vmem:[%s1963_s12 + $0xa4] sm:$0xf] %vm868_vm4, %v1439_v42  ;;  %v572_v44 = vadd.f32 %v1957_v31, %v571_v43  ;;  %v1519_v45 = vpop.f32.mrb[41].mxu0 }
 0x144   : > { %v574_v46 = vpop.f32.mrb[42].mxu0 }
 0x145   : > { %v678_v47 = vmax.f32 %v572_v44, 0.0  ;;  %v575_v48 = vadd.f32 %v1957_v31, %v574_v46  ;;  %v1520_v49 = vpop.f32.mrb[43].mxu0  ;;  %917 = sbr.rel (!%p1830_p4) target bundleno = 421 (0x1a5), region = 36 }
 0x147   : > { %v1418_v50 = vpack.c.bf16 %v678_v47, %v678_v47  ;;  %v679_v51 = vmax.f32 %v575_v48, 0.0 }
 0x149   : > { %889 = vst.msk [vmem:[%s1963_s12 + $0x50] sm:$0xf] %vm868_vm4, %v1418_v50  ;;  %v1419_v52 = vpack.c.bf16 %v679_v51, %v679_v51 }
 0x14b   : > { %890 = vst.msk [vmem:[%s1963_s12 + $0x54] sm:$0xf] %vm868_vm4, %v1419_v52 }
 0x14c   : > { %s2249_s18 = smov (!%p920_p8, %s919_s18), 42 }
 0x14d   : > { %s1386_s26 = sshll.u32 %s2249_s18, 6 }
 0x14e   : > { %p1389_p9 = scmp.eq.s32.totalorder %s1386_s26, 0 }
 0x14f   : > { %1690 = sdivrem.u32 (!%p1389_p9), %s2249_s18, 42 }
 0x150   : > { %928 = sbr.rel (%p1389_p9) target bundleno = 421 (0x1a5), region = 40 }
 0x158   : > { %s2100_s20 = spop.drf %1690 }
 0x159   : > { %p1390_p10 = scmp.le.s32.totalorder %s2100_s20, 0 }
 0x15a   : > { %s2242_s15 = smov (!%p1390_p10), %s2094_s24  ;;  %s2243_s25 = smov (!%p1390_p10), %s1963_s12 }
 0x15b   : > { %1247 = sbr.rel (%p1390_p10) target bundleno = 392 (0x188), region = 112  ;;  %s2109_s27 = smov (!%p1390_p10), 0  }
 0x15c   : > { %s2111_s28 = smov (!%p1390_p10), 0  }
 0x162 LB: >> { %v945_v31 = vld [vmem:[%s1756_s25] sm:$0xf]  ;;  %v947_v53 = vld [vmem:[%s1756_s25 + $0x4] sm:$0xf]  ;;  %v949_v54 = vld [vmem:[%s1756_s25 + $0x8] sm:$0xf]  ;;  %s1764_s28 = sphi %s2111_s28, %s939_s28   ;;  %s1760_s27 = sphi %s2109_s27, %s2244_s27   ;;  %s1756_s25 = sphi %s2243_s25, %s1034_s25   ;;  %s1752_s15 = sphi %s2242_s15, %s1035_s15  }
 0x163   : >> { %946 = vst [vmem:[%s1752_s15] sm:$0xf] %v945_v31  ;;  %948 = vst [vmem:[%s1752_s15 + $0x4] sm:$0xf] %v947_v53  ;;  %v951_v55 = vld [vmem:[%s1756_s25 + $0xc] sm:$0xf]  ;;  %s1029_s29 = sadd.s32 1, %s1760_s27 }
 0x164   : >> { %950 = vst [vmem:[%s1752_s15 + $0x8] sm:$0xf] %v949_v54  ;;  %v953_v56 = vld [vmem:[%s1756_s25 + $0x10] sm:$0xf]  ;;  %v955_v57 = vld [vmem:[%s1756_s25 + $0x14] sm:$0xf]  ;;  %p1030_p11 = scmp.ge.s32.totalorder %s1029_s29, %s2100_s20 }
 0x165   : >> { %952 = vst [vmem:[%s1752_s15 + $0xc] sm:$0xf] %v951_v55  ;;  %954 = vst [vmem:[%s1752_s15 + $0x10] sm:$0xf] %v953_v56  ;;  %v957_v58 = vld [vmem:[%s1756_s25 + $0x18] sm:$0xf] }
 0x166   : >> { %956 = vst [vmem:[%s1752_s15 + $0x14] sm:$0xf] %v955_v57  ;;  %v959_v59 = vld [vmem:[%s1756_s25 + $0x1c] sm:$0xf]  ;;  %v961_v60 = vld [vmem:[%s1756_s25 + $0x20] sm:$0xf] }
 0x167   : >> { %958 = vst [vmem:[%s1752_s15 + $0x18] sm:$0xf] %v957_v58  ;;  %960 = vst [vmem:[%s1752_s15 + $0x1c] sm:$0xf] %v959_v59  ;;  %v963_v61 = vld [vmem:[%s1756_s25 + $0x24] sm:$0xf] }
 0x168   : >> { %962 = vst [vmem:[%s1752_s15 + $0x20] sm:$0xf] %v961_v60  ;;  %v965_v62 = vld [vmem:[%s1756_s25 + $0x28] sm:$0xf]  ;;  %v967_v63 = vld [vmem:[%s1756_s25 + $0x2c] sm:$0xf] }
 0x169   : >> { %964 = vst [vmem:[%s1752_s15 + $0x24] sm:$0xf] %v963_v61  ;;  %966 = vst [vmem:[%s1752_s15 + $0x28] sm:$0xf] %v965_v62  ;;  %v969_v0 = vld [vmem:[%s1756_s25 + $0x30] sm:$0xf] }
 0x16a   : >> { %968 = vst [vmem:[%s1752_s15 + $0x2c] sm:$0xf] %v967_v63  ;;  %v971_v1 = vld [vmem:[%s1756_s25 + $0x34] sm:$0xf]  ;;  %v973_v2 = vld [vmem:[%s1756_s25 + $0x38] sm:$0xf] }
 0x16b   : >> { %970 = vst [vmem:[%s1752_s15 + $0x30] sm:$0xf] %v969_v0  ;;  %972 = vst [vmem:[%s1752_s15 + $0x34] sm:$0xf] %v971_v1  ;;  %v975_v3 = vld [vmem:[%s1756_s25 + $0x3c] sm:$0xf] }
 0x16c   : >> { %974 = vst [vmem:[%s1752_s15 + $0x38] sm:$0xf] %v973_v2  ;;  %v977_v4 = vld [vmem:[%s1756_s25 + $0x40] sm:$0xf]  ;;  %v979_v5 = vld [vmem:[%s1756_s25 + $0x44] sm:$0xf] }
 0x16d   : >> { %976 = vst [vmem:[%s1752_s15 + $0x3c] sm:$0xf] %v975_v3  ;;  %978 = vst [vmem:[%s1752_s15 + $0x40] sm:$0xf] %v977_v4  ;;  %v981_v6 = vld [vmem:[%s1756_s25 + $0x48] sm:$0xf] }
 0x16e   : >> { %980 = vst [vmem:[%s1752_s15 + $0x44] sm:$0xf] %v979_v5  ;;  %v983_v7 = vld [vmem:[%s1756_s25 + $0x4c] sm:$0xf]  ;;  %v985_v8 = vld [vmem:[%s1756_s25 + $0x50] sm:$0xf] }
 0x16f   : >> { %982 = vst [vmem:[%s1752_s15 + $0x48] sm:$0xf] %v981_v6  ;;  %984 = vst [vmem:[%s1752_s15 + $0x4c] sm:$0xf] %v983_v7  ;;  %v987_v9 = vld [vmem:[%s1756_s25 + $0x54] sm:$0xf] }
 0x170   : >> { %986 = vst [vmem:[%s1752_s15 + $0x50] sm:$0xf] %v985_v8  ;;  %v989_v10 = vld [vmem:[%s1756_s25 + $0x58] sm:$0xf]  ;;  %v991_v11 = vld [vmem:[%s1756_s25 + $0x5c] sm:$0xf] }
 0x171   : >> { %988 = vst [vmem:[%s1752_s15 + $0x54] sm:$0xf] %v987_v9  ;;  %990 = vst [vmem:[%s1752_s15 + $0x58] sm:$0xf] %v989_v10  ;;  %v993_v12 = vld [vmem:[%s1756_s25 + $0x60] sm:$0xf] }
 0x172   : >> { %992 = vst [vmem:[%s1752_s15 + $0x5c] sm:$0xf] %v991_v11  ;;  %v995_v13 = vld [vmem:[%s1756_s25 + $0x64] sm:$0xf]  ;;  %v997_v14 = vld [vmem:[%s1756_s25 + $0x68] sm:$0xf] }
 0x173   : >> { %994 = vst [vmem:[%s1752_s15 + $0x60] sm:$0xf] %v993_v12  ;;  %996 = vst [vmem:[%s1752_s15 + $0x64] sm:$0xf] %v995_v13  ;;  %v999_v15 = vld [vmem:[%s1756_s25 + $0x6c] sm:$0xf] }
 0x174   : >> { %998 = vst [vmem:[%s1752_s15 + $0x68] sm:$0xf] %v997_v14  ;;  %v1001_v16 = vld [vmem:[%s1756_s25 + $0x70] sm:$0xf]  ;;  %v1003_v17 = vld [vmem:[%s1756_s25 + $0x74] sm:$0xf] }
 0x175   : >> { %1000 = vst [vmem:[%s1752_s15 + $0x6c] sm:$0xf] %v999_v15  ;;  %1002 = vst [vmem:[%s1752_s15 + $0x70] sm:$0xf] %v1001_v16  ;;  %v1005_v18 = vld [vmem:[%s1756_s25 + $0x78] sm:$0xf] }
 0x176   : >> { %1004 = vst [vmem:[%s1752_s15 + $0x74] sm:$0xf] %v1003_v17  ;;  %v1007_v19 = vld [vmem:[%s1756_s25 + $0x7c] sm:$0xf]  ;;  %v1009_v20 = vld [vmem:[%s1756_s25 + $0x80] sm:$0xf] }
 0x177   : >> { %1006 = vst [vmem:[%s1752_s15 + $0x78] sm:$0xf] %v1005_v18  ;;  %1008 = vst [vmem:[%s1752_s15 + $0x7c] sm:$0xf] %v1007_v19  ;;  %v1011_v21 = vld [vmem:[%s1756_s25 + $0x84] sm:$0xf] }
 0x178   : >> { %1010 = vst [vmem:[%s1752_s15 + $0x80] sm:$0xf] %v1009_v20  ;;  %v1013_v22 = vld [vmem:[%s1756_s25 + $0x88] sm:$0xf]  ;;  %v1015_v23 = vld [vmem:[%s1756_s25 + $0x8c] sm:$0xf] }
 0x179   : >> { %1012 = vst [vmem:[%s1752_s15 + $0x84] sm:$0xf] %v1011_v21  ;;  %1014 = vst [vmem:[%s1752_s15 + $0x88] sm:$0xf] %v1013_v22  ;;  %v1017_v24 = vld [vmem:[%s1756_s25 + $0x90] sm:$0xf] }
 0x17a   : >> { %1016 = vst [vmem:[%s1752_s15 + $0x8c] sm:$0xf] %v1015_v23  ;;  %v1019_v25 = vld [vmem:[%s1756_s25 + $0x94] sm:$0xf]  ;;  %v1021_v26 = vld [vmem:[%s1756_s25 + $0x98] sm:$0xf] }
 0x17b   : >> { %1018 = vst [vmem:[%s1752_s15 + $0x90] sm:$0xf] %v1017_v24  ;;  %1020 = vst [vmem:[%s1752_s15 + $0x94] sm:$0xf] %v1019_v25  ;;  %v1023_v27 = vld [vmem:[%s1756_s25 + $0x9c] sm:$0xf] }
 0x17c   : >> { %1022 = vst [vmem:[%s1752_s15 + $0x98] sm:$0xf] %v1021_v26  ;;  %v1025_v28 = vld [vmem:[%s1756_s25 + $0xa0] sm:$0xf]  ;;  %v1027_v29 = vld [vmem:[%s1756_s25 + $0xa4] sm:$0xf] }
 0x17d   : >> { %1024 = vst [vmem:[%s1752_s15 + $0x9c] sm:$0xf] %v1023_v27  ;;  %1026 = vst [vmem:[%s1752_s15 + $0xa0] sm:$0xf] %v1025_v28  ;;  %s2251_s29 = smov (%p1030_p11, %s1029_s29), 0  ;;  %s939_s28 = sadd.s32 1, %s1764_s28  }
 0x17e   : >> { %1028 = vst [vmem:[%s1752_s15 + $0xa4] sm:$0xf] %v1027_v29  ;;  %s1032_s30 = smul.u32 168, %s2251_s29  ;;  %p938_p12 = scmp.ge.s32.totalorder %s939_s28, %s2100_s20 }
 0x17f   : >> { %s2244_s27 = smov %s2251_s29 }
 0x180   : >> { %s1034_s25 = scalar_lea.vmem %s1963_s12, %s1032_s30 [#allocation2]   ;;  %s1035_s15 = scalar_lea.vmem %s2094_s24, %s1032_s30  }
 0x181   : > { %941 = sbr.rel (!%p938_p12) target bundleno = 354 (0x162), region = 118 }
 0x188 PF: > { %1692 = sdivrem.u32 %s2249_s18, 42 }
 0x189   : > { %s1391_s4 = smul.u32 168, %s2100_s20 }
 0x18b   : > { %s1040_s5 = scalar_lea.vmem %s1963_s12, %s1391_s4 [#allocation2]   ;;  %s1042_s6 = scalar_lea.vmem %s2094_s24, %s1391_s4  }
 0x191   : > { %s1693_s7 = spop.drf %1692 }
 0x192   : > { %p1393_p13 = scmp.le.s32.totalorder %s1693_s7, 0 }
 0x193   : > { %s1766_s8 = smov (!%p1393_p13), %s1042_s6   ;;  %s1770_s9 = smov (!%p1393_p13), %s1040_s5  }
 0x194   : > { %1261 = sbr.rel (%p1393_p13) target bundleno = 421 (0x1a5), region = 123  ;;  %s1774_s10 = smov (!%p1393_p13), 0  }
 0x195   : > { %s1778_s11 = smov (!%p1393_p13), 0  }
 0x19b LB: >> { %v1052_v30 = vld [vmem:[%s1772_s9] sm:$0xf]  ;;  %s1054_s14 = sadd.s32 1, %s1776_s10  ;;  %s1046_s11 = sadd.s32 1, %s1780_s11   ;;  %s1780_s11 = sphi %s1778_s11, %s1046_s11   ;;  %s1776_s10 = sphi %s1774_s10, %s1775_s10   ;;  %s1772_s9 = sphi %s1770_s9, %s1059_s9   ;;  %s1768_s8 = sphi %s1766_s8, %s1060_s8  }
 0x19c   : >> { %1053 = vst [vmem:[%s1768_s8] sm:$0xf] %v1052_v30  ;;  %p1055_p0 = scmp.ge.s32.totalorder %s1054_s14, %s1693_s7  ;;  %p1045_p1 = scmp.ge.s32.totalorder %s1046_s11, %s1693_s7 }
 0x19e   : >> { %s2253_s14 = smov (%p1055_p0, %s1054_s14), 0  ;;  %1048 = sbr.rel (!%p1045_p1) target bundleno = 411 (0x19b), region = 129 }
 0x19f   : >> { %s1394_s17 = sshll.u32 %s2253_s14, 2  ;;  %s1775_s10 = smov %s2253_s14  }
 0x1a0   : >> { %s1059_s9 = scalar_lea.vmem %s1040_s5, %s1394_s17 [#allocation2]   ;;  %s1060_s8 = scalar_lea.vmem %s1042_s6, %s1394_s17  }
 0x1a5 PF: > { %p10_p2 = scmp.ge.s32.totalorder %s1820_s16, 4   ;;  %s2245_s12 = smov %s1744_s13 }
 0x1a6   : > { %s2246_s13 = smov %s1828_s19  ;;  %s2247_s14 = smov %s1820_s16 }
 0x1a7   :  { %12 = sbr.rel (!%p10_p2) target bundleno = 2 (0x2), region = 140 }

// kernel: dqn_forward.5
= control target key start
LH: loop header
LB: loop body
LE: loop exit
PB: predicated region body
PF: predicated region fallthrough
CT: control target
= control target key end

     0   :  { %s1312_s12 = smov 0   ;;  %s1314_s13 = smov 0   ;;  %s1548_s0 = inlined_call_operand.vmem [shape: bf16[98,400], index: 0, kind: input, shape index: {}]   ;;  %s1549_s1 = inlined_call_operand.vmem [shape: bf16[400,32], index: 1, kind: input, shape index: {}]   ;;  %s1550_s2 = inlined_call_operand.vmem [shape: f32[1,32], index: 2, kind: input, shape index: {}]   ;;  %s1551_s3 = inlined_call_operand.vmem [shape: bf16[98,32], index: 3, kind: output, shape index: {}]  }
   0x1   :  { %s1316_s14 = smov 0  }
   0x2 LB: > { %s1325_s15 = sadd.s32 4294967295, %s1257_s14   ;;  %s1327_s16 = sadd.s32 1, %s1257_s14   ;;  %s1257_s14 = sphi %s1316_s14, %s1558_s14   ;;  %s1253_s13 = sphi %s1314_s13, %s1557_s13   ;;  %s1249_s12 = sphi %s1312_s12, %s1556_s12  }
   0x3   : > { %s85_s17 = ssub.s32 %s1257_s14, %s1327_s16  ;;  %s88_s18 = sadd.s32 1, %s1253_s13 }
   0x4   : > { %p86_p0 = scmp.eq.s32.totalorder %s85_s17, 0  ;;  %p98_p1 = scmp.ne.s32.totalorder %s1253_s13, %s1249_s12 }
   0x5   : > { %p99_p2 = scmp.eq.s32.totalorder %s1325_s15, 1  ;;  %p937_p3 = scmp.ge.s32.totalorder %s1257_s14, 1 }
   0x6   : > { %s1335_s19 = scalar_select %p86_p0, %s1253_s13, %s88_s18  }
   0x7   : > { %p1337_p4 = por %p99_p2, %p98_p1  ;;  %p149_p5 = scmp.lt.s32.totalorder %s1257_s14, 3 }
   0x9   : > { %p150_p6 = pnand %p937_p3, %p149_p5 }
   0xa   : > { %v1154_v0 = vld [vmem:[%s1549_s1 + $0x40] sm:$0xff] (!%p150_p6)   ;;  %v1291_v1 = vmov (!%p150_p6), 0   ;;  %v1157_v4 = vld [vmem:[%s1549_s1 + $0x48] sm:$0xff] (!%p150_p6)   ;;  %v1160_v7 = vld [vmem:[%s1549_s1 + $0x50] sm:$0xff] (!%p150_p6)   ;;  %s1372_s14 = sshll.u32 (!%p150_p6), %s1325_s15, 3  ;;  %vm500_vm0 = vcmask (!%p150_p6), 130048  }
   0xb   : > { %153 = sbr.rel (%p150_p6) target bundleno = 348 (0x15c), region = 32  ;;  %578 = vmatprep.subr.bf16.mxu1 (!%p150_p6), %v1291_v1  ;;  %v1155_v2 = vld [vmem:[%s1549_s1 + $0x80] sm:$0xff] (!%p150_p6)   ;;  %1025 = vmatprep.subr.bf16.mxu0 (!%p150_p6), %v1154_v0  ;;  %v1158_v5 = vld [vmem:[%s1549_s1 + $0x88] sm:$0xff] (!%p150_p6)   ;;  %v1161_v8 = vld [vmem:[%s1549_s1 + $0x90] sm:$0xff] (!%p150_p6)   ;;  %p184_p7 = scmp.lt.s32.totalorder (!%p150_p6), %s1372_s14, 12  ;;  %vm683_vm1 = vcmask (!%p150_p6), 257024  }
   0xc   : > { %v1156_v3 = vld [vmem:[%s1549_s1] sm:$0xff] (!%p150_p6)   ;;  %579 = vmatpush1.bf16.msra.mxu1 (!%p150_p6), %v1155_v2  ;;  %v1159_v6 = vld [vmem:[%s1549_s1 + $0x8] sm:$0xff] (!%p150_p6)   ;;  %v1162_v9 = vld [vmem:[%s1549_s1 + $0x10] sm:$0xff] (!%p150_p6)   ;;  %s175_s11 = sand.u32 (!%p150_p6), 1, %s1249_s12  }
   0xd   : > { %1026 = vmatpush3.bf16.msra.mxu0 (!%p150_p6), %v1156_v3  ;;  %580 = vmatprep.subr.bf16.mxu1 (!%p150_p6), %v1291_v1  ;;  %v1163_v10 = vld [vmem:[%s1549_s1 + $0x58] sm:$0xff] (!%p150_p6)   ;;  %v1166_v13 = vld [vmem:[%s1549_s1 + $0x60] sm:$0xff] (!%p150_p6)   ;;  %v1169_v16 = vld [vmem:[%s1549_s1 + $0x68] sm:$0xff] (!%p150_p6)   ;;  %s938_s17 = sshll.u32 (!%p150_p6), %s175_s11, 5 }
   0xe   : > { %1027 = vmatprep.subr.bf16.mxu0 (!%p150_p6), %v1157_v4  ;;  %v1164_v11 = vld [vmem:[%s1549_s1 + $0x98] sm:$0xff] (!%p150_p6)   ;;  %v1167_v14 = vld [vmem:[%s1549_s1 + $0xa0] sm:$0xff] (!%p150_p6)   ;;  %v1170_v17 = vld [vmem:[%s1549_s1 + $0xa8] sm:$0xff] (!%p150_p6)   ;;  %s1463_s12 = scalar_lea.vmem (!%p150_p6), [#allocation2], %s938_s17  }
   0xf   : > { %v1165_v12 = vld [vmem:[%s1549_s1 + $0x18] sm:$0xff] (!%p150_p6)   ;;  %v1168_v15 = vld [vmem:[%s1549_s1 + $0x20] sm:$0xff] (!%p150_p6)   ;;  %v1171_v18 = vld [vmem:[%s1549_s1 + $0x28] sm:$0xff] (!%p150_p6)  }
  0x10   : > { %581 = vmatpush1.bf16.msra.mxu1 (!%p150_p6), %v1158_v5  ;;  %v1172_v19 = vld [vmem:[%s1549_s1 + $0x70] sm:$0xff] (!%p150_p6)   ;;  %v1175_v22 = vld [vmem:[%s1549_s1 + $0x78] sm:$0xff] (!%p150_p6)   ;;  %v1181_v28 = vld [vmem:[%s1549_s1 + $0xc0] sm:$0xff] (!%p150_p6)  }
  0x11   : > { %1028 = vmatpush3.bf16.msra.mxu0 (!%p150_p6), %v1159_v6  ;;  %582 = vmatprep.subr.bf16.mxu1 (!%p150_p6), %v1291_v1  ;;  %v1173_v20 = vld [vmem:[%s1549_s1 + $0xb0] sm:$0xff] (!%p150_p6)   ;;  %v1176_v24 = vld [vmem:[%s1549_s1 + $0xb8] sm:$0xff] (!%p150_p6)   ;;  %v1458_v44 = vld [vmem:[%s1550_s2] ss:$0 sm:$0xff] (!%p150_p6) }
  0x12   : > { %1029 = vmatprep.subr.bf16.mxu0 %v1160_v7  ;;  %s185_s29 = scalar_select %p184_p7, %s1372_s14, 12  ;;  %v1174_v21 = vld [vmem:[%s1549_s1 + $0x30] sm:$0xff]   ;;  %v1177_v26 = vld [vmem:[%s1549_s1 + $0x38] sm:$0xff]  }
  0x13   : > { %s700_s18 = ssub.s32 (%p1337_p4), 13, %s1372_s14  ;;  %s1022_s21 = sshll.u32 (%p1337_p4), %s1325_s15, 5 }
  0x14   : > { %583 = vmatpush1.bf16.msra.mxu1 %v1161_v8  ;;  %s1013_s9 = sshll.u32 %s185_s29, 4  ;;  %p701_p8 = scmp.lt.s32.totalorder (%p1337_p4), %s700_s18, 8 }
  0x15   : > { %1030 = vmatpush3.bf16.msra.mxu0 %v1162_v9  ;;  %584 = vmatprep.subr.bf16.mxu1 %v1291_v1  ;;  %s1415_s25 = scalar_lea.vmem %s1548_s0, %s1013_s9  ;;  %s1494_s24 = scalar_lea.vmem (%p1337_p4), %s1551_s3, %s1022_s21  }
  0x16   : > { %1031 = vmatprep.subr.bf16.mxu0 %v1163_v10  ;;  %v1180_v23 = vld [vmem:[%s1415_s25 + $0x4] ss:$16 sps:$4 sm:$0xff]   ;;  %v1184_v25 = vld [vmem:[%s1415_s25 + $0xc] ss:$16 sps:$4 sm:$0xff]   ;;  %v1178_v27 = vld [vmem:[%s1415_s25] ss:$16 sps:$4 sm:$0xff]  }
  0x17   : > { %545 = vmatprep.mubr.bf16.mxu0 %v1180_v23  ;;  %984 = vmatprep.mubr.msk.bf16.mxu1 %vm500_vm0, %v1184_v25  ;;  %v1185_v29 = vld [vmem:[%s1415_s25 + $0x24] ss:$16 sps:$4 sm:$0xff]   ;;  %v1182_v30 = vld [vmem:[%s1415_s25 + $0x8] ss:$16 sps:$4 sm:$0xff]   ;;  %v1188_v31 = vld [vmem:[%s1415_s25 + $0x2c] ss:$16 sps:$4 sm:$0xff]  }
  0x18   : > { %585 = vmatpush1.bf16.msra.mxu1 %v1164_v11  ;;  %v1187_v32 = vld [vmem:[%s1415_s25 + $0x20] ss:$16 sps:$4 sm:$0xff]   ;;  %v1191_v33 = vld [vmem:[%s1415_s25 + $0x44] ss:$16 sps:$4 sm:$0xff]   ;;  %v1190_v34 = vld [vmem:[%s1415_s25 + $0x28] ss:$16 sps:$4 sm:$0xff]  }
  0x19   : > { %1032 = vmatpush3.bf16.msra.mxu0 %v1165_v12  ;;  %586 = vmatprep.subr.bf16.mxu1 %v1291_v1  ;;  %v1194_v35 = vld [vmem:[%s1415_s25 + $0x4c] ss:$16 sps:$4 sm:$0xff]   ;;  %v1193_v36 = vld [vmem:[%s1415_s25 + $0x40] ss:$16 sps:$4 sm:$0xff]   ;;  %v1197_v37 = vld [vmem:[%s1415_s25 + $0x64] ss:$16 sps:$4 sm:$0xff]  }
  0x1a   : > { %1033 = vmatprep.subr.bf16.mxu0 %v1166_v13  ;;  %v1196_v38 = vld [vmem:[%s1415_s25 + $0x48] ss:$16 sps:$4 sm:$0xff]   ;;  %v1200_v39 = vld [vmem:[%s1415_s25 + $0x6c] ss:$16 sps:$4 sm:$0xff]   ;;  %v1199_v40 = vld [vmem:[%s1415_s25 + $0x60] ss:$16 sps:$4 sm:$0xff]  }
  0x1b   : > { %v1202_v41 = vld [vmem:[%s1415_s25 + $0x68] ss:$16 sps:$4 sm:$0xff]  }
  0x1c   : > { %587 = vmatpush1.bf16.msra.mxu1 %v1167_v14 }
  0x1d   : > { %1034 = vmatpush3.bf16.msra.mxu0 %v1168_v15  ;;  %588 = vmatprep.subr.bf16.mxu1 %v1291_v1 }
  0x1e   : > { %1035 = vmatprep.subr.bf16.mxu0 %v1169_v16 }
  0x20   : > { %589 = vmatpush1.bf16.msra.mxu1 %v1170_v17 }
  0x21   : > { %1036 = vmatpush3.bf16.msra.mxu0 %v1171_v18  ;;  %590 = vmatprep.subr.bf16.mxu1 %v1291_v1 }
  0x22   : > { %1037 = vmatprep.subr.bf16.mxu0 %v1172_v19 }
  0x24   : > { %591 = vmatpush1.bf16.msra.mxu1 %v1173_v20 }
  0x25   : > { %1038 = vmatpush3.bf16.msra.mxu0 %v1174_v21  ;;  %592 = vmatprep.subr.bf16.mxu1 %v1291_v1 }
  0x26   : > { %1039 = vmatprep.subr.bf16.mxu0 %v1175_v22 }
  0x28   : > { %593 = vmatpush1.bf16.msra.mxu1 %v1176_v24 }
  0x29   : > { %1040 = vmatpush3.bf16.msra.mxu0 %v1177_v26  ;;  %594 = vmatprep.subr.bf16.mxu1 %v1291_v1 }
  0x2c   : > { %546 = vmatmul.mubr.bf16.vlgmr.msra.gmra.mrb[0].mxu0 %v1178_v27  ;;  %595 = vmatpush1.bf16.msra.mxu1 %v1181_v28 }
  0x2d   : > { %553 = vmatprep.mubr.bf16.mxu0 %v1185_v29 }
  0x2f   : > { %611 = vmatmul.mubr.bf16.vlgmr.msra.gmra.mrb[0].mxu1 %v1182_v30 }
  0x30   : > { %985 = vmatprep.mubr.msk.bf16.mxu1 %vm500_vm0, %v1188_v31 }
  0x34   : > { %554 = vmatmul.mubr.bf16.gmra.mrb[4].mxu0 %v1187_v32 }
  0x35   : > { %561 = vmatprep.mubr.bf16.mxu0 %v1191_v33 }
  0x37   : > { %619 = vmatmul.mubr.bf16.gmra.mrb[4].mxu1 %v1190_v34 }
  0x38   : > { %986 = vmatprep.mubr.msk.bf16.mxu1 %vm500_vm0, %v1194_v35 }
  0x3c   : > { %562 = vmatmul.mubr.bf16.gmra.mrb[8].mxu0 %v1193_v36 }
  0x3d   : > { %569 = vmatprep.mubr.bf16.mxu0 %v1197_v37 }
  0x3f   : > { %627 = vmatmul.mubr.bf16.gmra.mrb[8].mxu1 %v1196_v38 }
  0x40   : > { %987 = vmatprep.mubr.msk.bf16.mxu1 %vm500_vm0, %v1200_v39 }
  0x44   : > { %570 = vmatmul.mubr.bf16.gmra.mrb[12].mxu0 %v1199_v40 }
  0x47   : > { %635 = vmatmul.mubr.bf16.gmra.mrb[12].mxu1 %v1202_v41 }
  0xff   : > { %v1041_v42 = vpop.f32.mrb[0].mxu0 }
 0x100   : > { %v1042_v43 = vpop.f32.mrb[1].mxu0 }
 0x101   : > { %v1043_v45 = vadd.f32 %v1042_v43, %v1041_v42  ;;  %v1044_v46 = vpop.f32.mrb[2].mxu0 }
 0x102   : > { %v1045_v47 = vpop.f32.mrb[3].mxu0  ;;  %v612_v48 = vpop.f32.mrb[0].mxu1 }
 0x103   : > { %v1046_v49 = vadd.f32 %v1045_v47, %v1044_v46  ;;  %v548_v50 = vadd.f32 %v1043_v45, %v1458_v44  ;;  %v614_v51 = vpop.f32.mrb[1].mxu1 }
 0x104   : > { %v615_v52 = vpop.f32.mrb[2].mxu1 }
 0x105   : > { %v613_v53 = vadd.f32 %v612_v48, %v548_v50  ;;  %v551_v54 = vadd.f32 %v1046_v49, %v1458_v44  ;;  %v617_v55 = vpop.f32.mrb[3].mxu1 }
 0x107   : > { %v643_v56 = vmax.f32 %v613_v53, 0.0  ;;  %v616_v57 = vadd.f32 %v615_v52, %v551_v54  ;;  %v1047_v58 = vpop.f32.mrb[4].mxu0 }
 0x108   : > { %v1048_v59 = vpop.f32.mrb[5].mxu0 }
 0x109   : > { %v1014_v60 = vpack.c.bf16 %v643_v56, %v643_v56  ;;  %v644_v61 = vmax.f32 %v616_v57, 0.0  ;;  %v1049_v62 = vadd.f32 %v1048_v59, %v1047_v58  ;;  %v1050_v63 = vpop.f32.mrb[6].mxu0 }
 0x10a   : > { %v1051_v0 = vpop.f32.mrb[7].mxu0  ;;  %v620_v1 = vpop.f32.mrb[4].mxu1 }
 0x10b   : > { %684 = vst.msk [vmem:[%s1463_s12] sm:$0xf] %vm683_vm1, %v1014_v60  ;;  %v1015_v2 = vpack.c.bf16 %v644_v61, %v644_v61  ;;  %v1052_v3 = vadd.f32 %v1051_v0, %v1050_v63  ;;  %v556_v4 = vadd.f32 %v1049_v62, %v1458_v44  ;;  %v622_v5 = vpop.f32.mrb[5].mxu1 }
 0x10c   : > { %v623_v6 = vpop.f32.mrb[6].mxu1 }
 0x10d   : > { %685 = vst.msk [vmem:[%s1463_s12 + $0x4] sm:$0xf] %vm683_vm1, %v1015_v2  ;;  %v621_v7 = vadd.f32 %v620_v1, %v556_v4  ;;  %v559_v8 = vadd.f32 %v1052_v3, %v1458_v44  ;;  %v625_v9 = vpop.f32.mrb[7].mxu1 }
 0x10f   : > { %v645_v10 = vmax.f32 %v621_v7, 0.0  ;;  %v624_v11 = vadd.f32 %v623_v6, %v559_v8  ;;  %v1053_v12 = vpop.f32.mrb[8].mxu0 }
 0x110   : > { %v1054_v13 = vpop.f32.mrb[9].mxu0 }
 0x111   : > { %v1016_v14 = vpack.c.bf16 %v645_v10, %v645_v10  ;;  %v646_v15 = vmax.f32 %v624_v11, 0.0  ;;  %v1055_v16 = vadd.f32 %v1054_v13, %v1053_v12  ;;  %v1056_v17 = vpop.f32.mrb[10].mxu0 }
 0x112   : > { %v1057_v18 = vpop.f32.mrb[11].mxu0  ;;  %v628_v19 = vpop.f32.mrb[8].mxu1 }
 0x113   : > { %686 = vst.msk [vmem:[%s1463_s12 + $0x8] sm:$0xf] %vm683_vm1, %v1016_v14  ;;  %v1017_v20 = vpack.c.bf16 %v646_v15, %v646_v15  ;;  %v1058_v21 = vadd.f32 %v1057_v18, %v1056_v17  ;;  %v564_v22 = vadd.f32 %v1055_v16, %v1458_v44  ;;  %v630_v23 = vpop.f32.mrb[9].mxu1 }
 0x114   : > { %v631_v24 = vpop.f32.mrb[10].mxu1 }
 0x115   : > { %687 = vst.msk [vmem:[%s1463_s12 + $0xc] sm:$0xf] %vm683_vm1, %v1017_v20  ;;  %v629_v25 = vadd.f32 %v628_v19, %v564_v22  ;;  %v567_v26 = vadd.f32 %v1058_v21, %v1458_v44  ;;  %v633_v27 = vpop.f32.mrb[11].mxu1 }
 0x117   : > { %v647_v28 = vmax.f32 %v629_v25, 0.0  ;;  %v632_v29 = vadd.f32 %v631_v24, %v567_v26  ;;  %v1059_v30 = vpop.f32.mrb[12].mxu0 }
 0x118   : > { %v1060_v31 = vpop.f32.mrb[13].mxu0 }
 0x119   : > { %v1018_v32 = vpack.c.bf16 %v647_v28, %v647_v28  ;;  %v648_v33 = vmax.f32 %v632_v29, 0.0  ;;  %v1061_v34 = vadd.f32 %v1060_v31, %v1059_v30  ;;  %v1062_v35 = vpop.f32.mrb[14].mxu0 }
 0x11a   : > { %v1063_v36 = vpop.f32.mrb[15].mxu0  ;;  %v636_v37 = vpop.f32.mrb[12].mxu1 }
 0x11b   : > { %688 = vst.msk [vmem:[%s1463_s12 + $0x10] sm:$0xf] %vm683_vm1, %v1018_v32  ;;  %v1019_v38 = vpack.c.bf16 %v648_v33, %v648_v33  ;;  %v1064_v39 = vadd.f32 %v1063_v36, %v1062_v35  ;;  %v572_v40 = vadd.f32 %v1061_v34, %v1458_v44  ;;  %v638_v41 = vpop.f32.mrb[13].mxu1 }
 0x11c   : > { %v639_v42 = vpop.f32.mrb[14].mxu1 }
 0x11d   : > { %689 = vst.msk [vmem:[%s1463_s12 + $0x14] sm:$0xf] %vm683_vm1, %v1019_v38  ;;  %v637_v43 = vadd.f32 %v636_v37, %v572_v40  ;;  %v575_v45 = vadd.f32 %v1064_v39, %v1458_v44  ;;  %v641_v46 = vpop.f32.mrb[15].mxu1 }
 0x11f   : > { %v649_v47 = vmax.f32 %v637_v43, 0.0  ;;  %v640_v48 = vadd.f32 %v639_v42, %v575_v45  ;;  %698 = sbr.rel (!%p1337_p4) target bundleno = 348 (0x15c), region = 36 }
 0x121   : > { %v1020_v49 = vpack.c.bf16 %v649_v47, %v649_v47  ;;  %v650_v50 = vmax.f32 %v640_v48, 0.0 }
 0x123   : > { %690 = vst.msk [vmem:[%s1463_s12 + $0x18] sm:$0xf] %vm683_vm1, %v1020_v49  ;;  %v1021_v51 = vpack.c.bf16 %v650_v50, %v650_v50 }
 0x125   : > { %691 = vst.msk [vmem:[%s1463_s12 + $0x1c] sm:$0xf] %vm683_vm1, %v1021_v51 }
 0x126   : > { %s1560_s18 = smov (!%p701_p8, %s700_s18), 8 }
 0x127   : > { %s998_s25 = sshll.u32 %s1560_s18, 6 }
 0x128   : > { %p1001_p9 = scmp.eq.s32.totalorder %s998_s25, 0 }
 0x129   : > { %s1500_s26 = sshrl.u32 (!%p1001_p9), %s1560_s18, 3 }
 0x12a   : > { %709 = sbr.rel (%p1001_p9) target bundleno = 348 (0x15c), region = 40  ;;  %p1002_p10 = scmp.le.s32.totalorder (!%p1001_p9), %s1500_s26, 0 }
 0x131   : > { %890 = sbr.rel (%p1002_p10) target bundleno = 327 (0x147), region = 112  ;;  %s1553_s15 = smov (!%p1002_p10), %s1494_s24 }
 0x132   : > { %s1554_s20 = smov (!%p1002_p10), %s1463_s12  ;;  %s1509_s14 = smov (!%p1002_p10), 0  }
 0x133   : > { %s1511_s27 = smov (!%p1002_p10), 0  }
 0x138 LB: >> { %v725_v44 = vld [vmem:[%s1265_s20] sm:$0xf]  ;;  %v727_v52 = vld [vmem:[%s1265_s20 + $0x4] sm:$0xf]  ;;  %v729_v53 = vld [vmem:[%s1265_s20 + $0x8] sm:$0xf]  ;;  %s1273_s27 = sphi %s1511_s27, %s719_s27   ;;  %s1269_s14 = sphi %s1509_s14, %s1555_s14   ;;  %s1265_s20 = sphi %s1554_s20, %s746_s20   ;;  %s1261_s15 = sphi %s1553_s15, %s747_s15  }
 0x139   : >> { %726 = vst [vmem:[%s1261_s15] sm:$0xf] %v725_v44  ;;  %728 = vst [vmem:[%s1261_s15 + $0x4] sm:$0xf] %v727_v52  ;;  %v731_v54 = vld [vmem:[%s1265_s20 + $0xc] sm:$0xf]  ;;  %s741_s28 = sadd.s32 1, %s1269_s14 }
 0x13a   : >> { %730 = vst [vmem:[%s1261_s15 + $0x8] sm:$0xf] %v729_v53  ;;  %v733_v55 = vld [vmem:[%s1265_s20 + $0x10] sm:$0xf]  ;;  %v735_v56 = vld [vmem:[%s1265_s20 + $0x14] sm:$0xf]  ;;  %p742_p11 = scmp.ge.s32.totalorder %s741_s28, %s1500_s26 }
 0x13b   : >> { %732 = vst [vmem:[%s1261_s15 + $0xc] sm:$0xf] %v731_v54  ;;  %734 = vst [vmem:[%s1261_s15 + $0x10] sm:$0xf] %v733_v55  ;;  %v737_v57 = vld [vmem:[%s1265_s20 + $0x18] sm:$0xf] }
 0x13c   : >> { %736 = vst [vmem:[%s1261_s15 + $0x14] sm:$0xf] %v735_v56  ;;  %v739_v58 = vld [vmem:[%s1265_s20 + $0x1c] sm:$0xf]  ;;  %738 = vst [vmem:[%s1261_s15 + $0x18] sm:$0xf] %v737_v57 }
 0x13d   : >> { %740 = vst [vmem:[%s1261_s15 + $0x1c] sm:$0xf] %v739_v58  ;;  %s1562_s28 = smov (%p742_p11, %s741_s28), 0  ;;  %s719_s27 = sadd.s32 1, %s1273_s27  }
 0x13e   : >> { %s1003_s29 = sshll.u32 %s1562_s28, 5  ;;  %p718_p12 = scmp.ge.s32.totalorder %s719_s27, %s1500_s26 }
 0x13f   : >> { %s746_s20 = scalar_lea.vmem %s1463_s12, %s1003_s29 [#allocation2]   ;;  %s747_s15 = scalar_lea.vmem %s1494_s24, %s1003_s29  }
 0x140   : >> { %s1555_s14 = smov %s1562_s28  ;;  %721 = sbr.rel (!%p718_p12) target bundleno = 312 (0x138), region = 118 }
 0x147 PF: > { %s1530_s30 = sand.u32 7, %s1560_s18   ;;  %s1023_s4 = sshll.u32 %s1500_s26, 5 }
 0x148   : > { %s752_s5 = scalar_lea.vmem %s1463_s12, %s1023_s4 [#allocation2]   ;;  %s754_s6 = scalar_lea.vmem %s1494_s24, %s1023_s4  }
 0x149   : > { %p1008_p13 = scmp.le.s32.totalorder %s1530_s30, 0 }
 0x14a   : > { %s1275_s7 = smov (!%p1008_p13), %s754_s6   ;;  %s1279_s8 = smov (!%p1008_p13), %s752_s5  }
 0x14b   : > { %904 = sbr.rel (%p1008_p13) target bundleno = 348 (0x15c), region = 123  ;;  %s1283_s9 = smov (!%p1008_p13), 0  }
 0x14c   : > { %s1287_s10 = smov (!%p1008_p13), 0  }
 0x152 LB: >> { %v764_v59 = vld [vmem:[%s1281_s8] sm:$0xf]  ;;  %s766_s11 = sadd.s32 1, %s1285_s9  ;;  %s758_s10 = sadd.s32 1, %s1289_s10   ;;  %s1289_s10 = sphi %s1287_s10, %s758_s10   ;;  %s1285_s9 = sphi %s1283_s9, %s1284_s9   ;;  %s1281_s8 = sphi %s1279_s8, %s771_s8   ;;  %s1277_s7 = sphi %s1275_s7, %s772_s7  }
 0x153   : >> { %765 = vst [vmem:[%s1277_s7] sm:$0xf] %v764_v59  ;;  %p767_p0 = scmp.ge.s32.totalorder %s766_s11, %s1530_s30  ;;  %p757_p1 = scmp.ge.s32.totalorder %s758_s10, %s1530_s30 }
 0x155   : >> { %s1564_s11 = smov (%p767_p0, %s766_s11), 0  ;;  %760 = sbr.rel (!%p757_p1) target bundleno = 338 (0x152), region = 129 }
 0x156   : >> { %s1009_s17 = sshll.u32 %s1564_s11, 2  ;;  %s1284_s9 = smov %s1564_s11  }
 0x157   : >> { %s771_s8 = scalar_lea.vmem %s752_s5, %s1009_s17 [#allocation2]   ;;  %s772_s7 = scalar_lea.vmem %s754_s6, %s1009_s17  }
 0x15c PF: > { %p10_p2 = scmp.ge.s32.totalorder %s1327_s16, 4   ;;  %s1556_s12 = smov %s1253_s13 }
 0x15d   : > { %s1557_s13 = smov %s1335_s19  ;;  %s1558_s14 = smov %s1327_s16 }
 0x15e   :  { %12 = sbr.rel (!%p10_p2) target bundleno = 2 (0x2), region = 140 }

// kernel: dqn_forward.7
= control target key start
LH: loop header
LB: loop body
LE: loop exit
PB: predicated region body
PF: predicated region fallthrough
CT: control target
= control target key end

     0   :  { %v217_v1 = vmov 0.0   ;;  %vm218_vm0 = vmmov 0   ;;  %s282_s0 = inlined_call_operand.vmem [shape: bf16[2,128], index: 0, kind: input, shape index: {}]   ;;  %s283_s1 = inlined_call_operand.vmem [shape: bf16[128,2], index: 1, kind: input, shape index: {}]   ;;  %s284_s2 = inlined_call_operand.vmem [shape: f32[1,2], index: 2, kind: input, shape index: {}]   ;;  %s285_s3 = inlined_call_operand.hbm [shape: f32[2,2], index: 3, kind: output, shape index: {}]  }
   0x1   :  { %v185_v0 = vld [vmem:[%s283_s1] sm:$0xff]   ;;  %162 = vmatprep.subr.bf16.mxu0 %v217_v1  ;;  %v186_v2 = vld [vmem:[%s283_s1 + $0x8] sm:$0xff]   ;;  %178 = vmatprep.mubr.msk.bf16.mxu0 %vm218_vm0, %v217_v1  ;;  %v187_v3 = vld [vmem:[%s283_s1 + $0x10] sm:$0xff]  }
   0x2   :  { %163 = vmatpush3.bf16.msra.mxu0 %v185_v0 }
   0x3   :  { %164 = vmatprep.subr.bf16.mxu0 %v217_v1 }
   0x6   :  { %165 = vmatpush3.bf16.msra.mxu0 %v186_v2 }
   0x7   :  { %166 = vmatprep.subr.bf16.mxu0 %v217_v1 }
   0x8   :  { %8 = vsyncpa [#allocation3], 0  ;;  %v188_v4 = vld [vmem:[%s283_s1 + $0x18] sm:$0xff]   ;;  %v189_v5 = vld [vmem:[%s283_s1 + $0x20] sm:$0xff]   ;;  %s219_s5 = smov [#allocation2]   ;;  %vm128_vm1 = vcmask 9216  }
   0x9   :  { %v190_v6 = vld [vmem:[%s283_s1 + $0x28] sm:$0xff]   ;;  %v191_v7 = vld [vmem:[%s283_s1 + $0x30] sm:$0xff]   ;;  %v192_v8 = vld [vmem:[%s283_s1 + $0x38] sm:$0xff]   ;;  %s136_s6 = sshll.u32 %s219_s5, 4  ;;  %s137_s6 = int_to_ptr.vmem [resolvable:$true] %s136_s6 }
   0xa   :  { %167 = vmatpush3.bf16.msra.mxu0 %v187_v3  ;;  %v16_v9 = vld [vmem:[%s282_s0] sm:$0x1]  ;;  %s193_s1 = scalar_lea.vmem %s137_s6, 32  ;;  %p198_p1 = scmp.lt.s32.totalorder %s137_s6, %s137_s6 }
   0xb   :  { %168 = vmatprep.subr.bf16.mxu0 %v217_v1  ;;  %v144_v10 = vld [vmem:[%s284_s2] ss:$0 sm:$0xff]  ;;  %p194_p0 = scmp.ne.s32.totalorder %s137_s6, %s193_s1  ;;  %p199_p2 = scmp.lt.s32.totalorder %s193_s1, %s193_s1 }
   0xd   :  { %p200_p3 = por %p199_p2, %p198_p1 }
   0xe   :  { %169 = vmatpush3.bf16.msra.mxu0 %v188_v4 }
   0xf   :  { %170 = vmatprep.subr.bf16.mxu0 %v217_v1  ;;  %p201_p4 = pnand %p200_p3, %p194_p0 }
  0x12   :  { %171 = vmatpush3.bf16.msra.mxu0 %v189_v5 }
  0x13   :  { %172 = vmatprep.subr.bf16.mxu0 %v217_v1 }
  0x16   :  { %173 = vmatpush3.bf16.msra.mxu0 %v190_v6 }
  0x17   :  { %174 = vmatprep.subr.bf16.mxu0 %v217_v1 }
  0x1a   :  { %175 = vmatpush3.bf16.msra.mxu0 %v191_v7 }
  0x1b   :  { %176 = vmatprep.subr.bf16.mxu0 %v217_v1 }
  0x1e   :  { %177 = vmatpush3.bf16.msra.mxu0 %v192_v8 }
  0x21   :  { %179 = vmatmul.mubr.bf16.vlgmr.msra.gmra.mrb[0].mxu0 %v16_v9 }
  0xf4   :  { %v122_v11 = vpop.f32.mrb[0].mxu0 }
  0xf5   :  { %v123_v12 = vadd.f32 %v144_v10, %v122_v11  ;;  %v180_v13 = vpop.f32.mrb[1].mxu0 }
  0xf6   :  { %v125_v14 = vpop.f32.mrb[2].mxu0 }
  0xf7   :  { %v181_v15 = vpop.f32.mrb[3].mxu0  ;;  %129 = vst.msk [vmem:[#allocation2] sm:$0x3] %vm128_vm1, %v123_v12 }
  0xf8   :  { %204 = shalt.err (!%p201_p4)
}
  0xf9   :  { %s205_s2 = scalar_lea.hbm %s285_s3, 32 }
  0xfa   :  { %p206_p5 = scmp.ne.s32.totalorder %s285_s3, %s205_s2  ;;  %p209_p6 = scmp.lt.u32.totalorder %s205_s2, %s285_s3 }
  0xfc   :  { %p211_p7 = pnand %p209_p6, %p206_p5 }
  0xfe   :  { %214 = shalt.err (!%p211_p7)
}
  0xff   :  { %139 = dma.vmem_to_hbm [thread:$0]  %s137_s6, 32, %s285_s3, [#allocation3]  }
 0x100   :  { %215 = dma.done.wait [#allocation3], 32  }
 0x101   :  { %216 = vsyncadd [#allocation3], 4294967264 }
 0x102   :  { %143 = vsyncpa [#allocation3], 1 }

// kernel: dqn_forward.6
= control target key start
LH: loop header
LB: loop body
LE: loop exit
PB: predicated region body
PF: predicated region fallthrough
CT: control target
= control target key end

     0   :  { %v817_v41 = vmov 0.0   ;;  %vm818_vm0 = vmmov 0   ;;  %vm450_vm1 = vcmask 261120   ;;  %vm616_vm2 = vcmask 257024   ;;  %s1007_s1 = inlined_call_operand.vmem [shape: bf16[800,32], index: 1, kind: input, shape index: {}]   ;;  %s1008_s0 = inlined_call_operand.vmem [shape: bf16[8,800], index: 0, kind: input, shape index: {}]   ;;  %s1009_s2 = inlined_call_operand.vmem [shape: f32[1,32], index: 2, kind: input, shape index: {}]   ;;  %s1010_s3 = inlined_call_operand.vmem [shape: bf16[8,32], index: 3, kind: output, shape index: {}]  }
   0x1   :  { %v760_v0 = vld [vmem:[%s1007_s1 + $0x40] sm:$0xff]   ;;  %v764_v4 = vld [vmem:[%s1007_s1 + $0x48] sm:$0xff]   ;;  %v768_v8 = vld [vmem:[%s1007_s1 + $0x50] sm:$0xff]  }
   0x2   :  { %v761_v1 = vld [vmem:[%s1007_s1] sm:$0xff]   ;;  %681 = vmatprep.subr.bf16.mxu0 %v760_v0  ;;  %v765_v5 = vld [vmem:[%s1007_s1 + $0x8] sm:$0xff]   ;;  %v769_v9 = vld [vmem:[%s1007_s1 + $0x10] sm:$0xff]  }
   0x3   :  { %v762_v2 = vld [vmem:[%s1007_s1 + $0xc0] sm:$0xff]   ;;  %682 = vmatpush3.bf16.msra.mxu0 %v761_v1  ;;  %v766_v6 = vld [vmem:[%s1007_s1 + $0xc8] sm:$0xff]   ;;  %v770_v10 = vld [vmem:[%s1007_s1 + $0xd0] sm:$0xff]  }
   0x4   :  { %v763_v3 = vld [vmem:[%s1007_s1 + $0x80] sm:$0xff]   ;;  %703 = vmatprep.subr.bf16.mxu1 %v762_v2  ;;  %683 = vmatprep.subr.bf16.mxu0 %v764_v4  ;;  %v767_v7 = vld [vmem:[%s1007_s1 + $0x88] sm:$0xff]   ;;  %v771_v11 = vld [vmem:[%s1007_s1 + $0x90] sm:$0xff]  }
   0x5   :  { %704 = vmatpush3.bf16.msra.mxu1 %v763_v3  ;;  %v772_v12 = vld [vmem:[%s1007_s1 + $0x58] sm:$0xff]   ;;  %v776_v16 = vld [vmem:[%s1007_s1 + $0x60] sm:$0xff]   ;;  %v780_v20 = vld [vmem:[%s1007_s1 + $0x68] sm:$0xff]  }
   0x6   :  { %705 = vmatprep.subr.bf16.mxu1 %v766_v6  ;;  %v773_v13 = vld [vmem:[%s1007_s1 + $0x18] sm:$0xff]   ;;  %v777_v17 = vld [vmem:[%s1007_s1 + $0x20] sm:$0xff]   ;;  %v781_v21 = vld [vmem:[%s1007_s1 + $0x28] sm:$0xff]  }
   0x7   :  { %684 = vmatpush3.bf16.msra.mxu0 %v765_v5  ;;  %v774_v14 = vld [vmem:[%s1007_s1 + $0xd8] sm:$0xff]   ;;  %v778_v18 = vld [vmem:[%s1007_s1 + $0xe0] sm:$0xff]   ;;  %v782_v22 = vld [vmem:[%s1007_s1 + $0xe8] sm:$0xff]  }
   0x8   :  { %685 = vmatprep.subr.bf16.mxu0 %v768_v8  ;;  %v775_v15 = vld [vmem:[%s1007_s1 + $0x98] sm:$0xff]   ;;  %v779_v19 = vld [vmem:[%s1007_s1 + $0xa0] sm:$0xff]   ;;  %v783_v23 = vld [vmem:[%s1007_s1 + $0xa8] sm:$0xff]  }
   0x9   :  { %706 = vmatpush3.bf16.msra.mxu1 %v767_v7  ;;  %v784_v24 = vld [vmem:[%s1007_s1 + $0x70] sm:$0xff]   ;;  %v788_v28 = vld [vmem:[%s1007_s1 + $0x78] sm:$0xff]   ;;  %v15_v31 = vld [vmem:[%s1008_s0] sm:$0xff] }
   0xa   :  { %707 = vmatprep.subr.bf16.mxu1 %v770_v10  ;;  %v785_v25 = vld [vmem:[%s1007_s1 + $0x30] sm:$0xff]   ;;  %v789_v29 = vld [vmem:[%s1007_s1 + $0x38] sm:$0xff]   ;;  %v623_v32 = vcombine.low %v15_v31, %v15_v31  ;;  %v624_v33 = vcombine.high %v15_v31, %v15_v31  ;;  %v795_v35 = vld [vmem:[%s1007_s1 + $0x140] sm:$0xff]  }
   0xb   :  { %686 = vmatpush3.bf16.msra.mxu0 %v769_v9  ;;  %v786_v26 = vld [vmem:[%s1007_s1 + $0xf0] sm:$0xff]   ;;  %v790_v30 = vld [vmem:[%s1007_s1 + $0xf8] sm:$0xff]   ;;  %v16_v36 = vld [vmem:[%s1008_s0 + $0x8] sm:$0xff] }
   0xc   :  { %687 = vmatprep.subr.bf16.mxu0 %v772_v12  ;;  %v787_v27 = vld [vmem:[%s1007_s1 + $0xb0] sm:$0xff]   ;;  %v794_v34 = vld [vmem:[%s1007_s1 + $0xb8] sm:$0xff]   ;;  %486 = vmatprep.mubr.bf16.mxu0 %v624_v33  ;;  %v625_v37 = vcombine.low %v16_v36, %v16_v36  ;;  %v626_v38 = vcombine.high %v16_v36, %v16_v36  ;;  %v798_v39 = vld [vmem:[%s1007_s1 + $0x100] sm:$0xff]  }
   0xd   :  { %708 = vmatpush3.bf16.msra.mxu1 %v771_v11  ;;  %v799_v40 = vld [vmem:[%s1007_s1 + $0x148] sm:$0xff]   ;;  %v801_v43 = vld [vmem:[%s1007_s1 + $0x150] sm:$0xff]   ;;  %v803_v45 = vld [vmem:[%s1007_s1 + $0x158] sm:$0xff]  }
   0xe   :  { %709 = vmatprep.subr.bf16.mxu1 %v774_v14  ;;  %526 = vmatprep.mubr.bf16.mxu1 %v626_v38  ;;  %v800_v42 = vld [vmem:[%s1007_s1 + $0x108] sm:$0xff]   ;;  %v802_v44 = vld [vmem:[%s1007_s1 + $0x110] sm:$0xff]   ;;  %v804_v46 = vld [vmem:[%s1007_s1 + $0x118] sm:$0xff]  }
   0xf   :  { %688 = vmatpush3.bf16.msra.mxu0 %v773_v13  ;;  %v805_v47 = vld [vmem:[%s1007_s1 + $0x160] sm:$0xff]   ;;  %v807_v50 = vld [vmem:[%s1007_s1 + $0x168] sm:$0xff]   ;;  %v17_v51 = vld [vmem:[%s1008_s0 + $0x10] sm:$0xff] }
  0x10   :  { %689 = vmatprep.subr.bf16.mxu0 %v776_v16  ;;  %v811_v48 = vld [vmem:[%s1007_s1 + $0x180] sm:$0xff]   ;;  %v628_v52 = vcombine.high %v17_v51, %v17_v51  ;;  %v816_v53 = vld [vmem:[%s1007_s1 + $0x188] sm:$0xff]   ;;  %v793_v54 = vld [vmem:[%s1008_s0 + $0x18] ss:$0 sps:$4 sm:$0xff]   ;;  %v627_v60 = vcombine.low %v17_v51, %v17_v51 }
  0x11   :  { %710 = vmatpush3.bf16.msra.mxu1 %v775_v15  ;;  %v806_v49 = vld [vmem:[%s1007_s1 + $0x120] sm:$0xff]   ;;  %v808_v55 = vld [vmem:[%s1007_s1 + $0x128] sm:$0xff]   ;;  %v809_v56 = vld [vmem:[%s1007_s1 + $0x170] sm:$0xff]  }
  0x12   :  { %711 = vmatprep.subr.bf16.mxu1 %v778_v18  ;;  %v810_v57 = vld [vmem:[%s1007_s1 + $0x130] sm:$0xff]   ;;  %v812_v58 = vld [vmem:[%s1007_s1 + $0x178] sm:$0xff]   ;;  %v622_v62 = vld [vmem:[%s1009_s2] ss:$0 sm:$0xff] }
  0x13   :  { %690 = vmatpush3.bf16.msra.mxu0 %v777_v17  ;;  %v813_v59 = vld [vmem:[%s1007_s1 + $0x138] sm:$0xff]  }
  0x14   :  { %691 = vmatprep.subr.bf16.mxu0 %v780_v20 }
  0x15   :  { %712 = vmatpush3.bf16.msra.mxu1 %v779_v19 }
  0x16   :  { %713 = vmatprep.subr.bf16.mxu1 %v782_v22 }
  0x17   :  { %692 = vmatpush3.bf16.msra.mxu0 %v781_v21 }
  0x18   :  { %693 = vmatprep.subr.bf16.mxu0 %v784_v24 }
  0x19   :  { %714 = vmatpush3.bf16.msra.mxu1 %v783_v23 }
  0x1a   :  { %715 = vmatprep.subr.bf16.mxu1 %v786_v26 }
  0x1b   :  { %694 = vmatpush3.bf16.msra.mxu0 %v785_v25 }
  0x1c   :  { %695 = vmatprep.subr.bf16.mxu0 %v788_v28 }
  0x1d   :  { %716 = vmatpush3.bf16.msra.mxu1 %v787_v27 }
  0x1e   :  { %717 = vmatprep.subr.bf16.mxu1 %v790_v30 }
  0x1f   :  { %696 = vmatpush3.bf16.msra.mxu0 %v789_v29 }
  0x20   :  { %725 = vmatprep.subr.bf16.mxu0 %v795_v35 }
  0x21   :  { %718 = vmatpush3.bf16.msra.mxu1 %v794_v34 }
  0x22   :  { %487 = vmatmul.mubr.bf16.vlgmr.msra.gmra.mrb[0].mxu0 %v623_v32  ;;  %750 = vmatprep.subr.bf16.mxu1 %v817_v41 }
  0x23   :  { %726 = vmatpush3.bf16.msra.mxu0 %v798_v39  ;;  %566 = vmatprep.mubr.bf16.mxu0 %v628_v52 }
  0x24   :  { %527 = vmatmul.mubr.bf16.vlgmr.msra.gmra.mrb[0].mxu1 %v625_v37  ;;  %727 = vmatprep.subr.bf16.mxu0 %v799_v40 }
  0x25   :  { %754 = vmatprep.mubr.msk.bf16.mxu1 %vm818_vm0, %v817_v41  ;;  %751 = vmatpush3.bf16.msra.mxu1 %v811_v48 }
  0x26   :  { %752 = vmatprep.subr.bf16.mxu1 %v817_v41 }
  0x27   :  { %728 = vmatpush3.bf16.msra.mxu0 %v800_v42 }
  0x28   :  { %729 = vmatprep.subr.bf16.mxu0 %v801_v43 }
  0x29   :  { %753 = vmatpush3.bf16.msra.mxu1 %v816_v53 }
  0x2b   :  { %730 = vmatpush3.bf16.msra.mxu0 %v802_v44 }
  0x2c   :  { %731 = vmatprep.subr.bf16.mxu0 %v803_v45  ;;  %755 = vmatmul.mubr.msk.bf16.vlgmr.msra.gmra.mrb[4].mxu1 %vm450_vm1, %v793_v54 }
  0x2f   :  { %732 = vmatpush3.bf16.msra.mxu0 %v804_v46 }
  0x30   :  { %733 = vmatprep.subr.bf16.mxu0 %v805_v47 }
  0x33   :  { %734 = vmatpush3.bf16.msra.mxu0 %v806_v49 }
  0x34   :  { %735 = vmatprep.subr.bf16.mxu0 %v807_v50 }
  0x37   :  { %736 = vmatpush3.bf16.msra.mxu0 %v808_v55 }
  0x38   :  { %737 = vmatprep.subr.bf16.mxu0 %v809_v56 }
  0x3b   :  { %738 = vmatpush3.bf16.msra.mxu0 %v810_v57 }
  0x3c   :  { %739 = vmatprep.subr.bf16.mxu0 %v812_v58 }
  0x3f   :  { %740 = vmatpush3.bf16.msra.mxu0 %v813_v59 }
  0x42   :  { %567 = vmatmul.mubr.bf16.vlgmr.msra.gmra.mrb[4].mxu0 %v627_v60 }
  0xf5   :  { %v697_v61 = vpop.f32.mrb[0].mxu0 }
  0xf6   :  { %v698_v63 = vpop.f32.mrb[1].mxu0 }
  0xf7   :  { %v699_v0 = vadd.f32 %v698_v63, %v697_v61  ;;  %v700_v1 = vpop.f32.mrb[2].mxu0  ;;  %v719_v2 = vpop.f32.mrb[0].mxu1 }
  0xf8   :  { %v701_v3 = vpop.f32.mrb[3].mxu0  ;;  %v720_v5 = vpop.f32.mrb[1].mxu1 }
  0xf9   :  { %v489_v4 = vadd.f32 %v699_v0, %v622_v62  ;;  %v721_v6 = vadd.f32 %v720_v5, %v719_v2  ;;  %v722_v7 = vpop.f32.mrb[2].mxu1 }
  0xfa   :  { %v723_v8 = vpop.f32.mrb[3].mxu1 }
  0xfb   :  { %v529_v9 = vadd.f32 %v721_v6, %v489_v4 }
  0xff   :  { %v608_v10 = vpop.f32.mrb[4].mxu1 }
 0x100   :  { %v756_v11 = vpop.f32.mrb[5].mxu1 }
 0x101   :  { %v611_v12 = vpop.f32.mrb[6].mxu1 }
 0x102   :  { %v757_v13 = vpop.f32.mrb[7].mxu1 }
 0x115   :  { %v741_v14 = vpop.f32.mrb[4].mxu0 }
 0x116   :  { %v742_v15 = vpop.f32.mrb[5].mxu0 }
 0x117   :  { %v743_v16 = vadd.f32 %v742_v15, %v741_v14  ;;  %v744_v17 = vpop.f32.mrb[6].mxu0 }
 0x118   :  { %v745_v18 = vpop.f32.mrb[7].mxu0 }
 0x119   :  { %v569_v19 = vadd.f32 %v743_v16, %v529_v9 }
 0x11b   :  { %v609_v20 = vadd.f32 %v608_v10, %v569_v19 }
 0x11d   :  { %v614_v21 = vmax.f32 %v609_v20, 0.0 }
 0x11f   :  { %v615_v22 = vpack.c.bf16 %v614_v21, %v614_v21 }
 0x121   :  { %617 = vst.msk [vmem:[%s1010_s3] sm:$0xf] %vm616_vm2, %v615_v22 }

</bundles_post_ra>
